<compile_context>
chip_gen: v7x
topology: tpu7x:2x2x1
jax: 0.10.0
libtpu: 0.0.40
codegen_flags: <defaults>
</compile_context>

<pallas_src>
import functools

import jax
import jax.numpy as jnp
from jax.experimental import pallas as pl
from jax.experimental.pallas import tpu as pltpu


def _round_up(x, m):
    return (x + m - 1) // m * m


def _choose_tile(padded, max_tile, prefer_blocks=1):
    """Largest multiple of 128 <= cap that divides `padded` (padded % 128 == 0).

    `prefer_blocks` caps the tile so at least that many blocks exist when
    the array is large enough (lets the M axis shard across TensorCores).
    """
    cap = max_tile
    if prefer_blocks > 1 and padded >= prefer_blocks * 128:
        cap = min(cap, padded // prefer_blocks)
    t = min(max(128, (cap // 128) * 128), padded)
    while padded % t != 0:
        t -= 128
    return t


def _dlgn_kernel(*refs, depth, beta, hadamard_dtype):
    # refs = (inp, W0..W{d-1}, data_scores_T, out, inp_score_scratch)
    inp_ref = refs[0]                    # (tile_m, dim_in)            f32
    w_refs = refs[1:1 + depth]           # gating layers               f32
    dsc_ref = refs[1 + depth]            # (depth, width, tile_n)      score dtype
    out_ref = refs[2 + depth]            # (tile_m, 1)                 f32
    isc_ref = refs[3 + depth]            # scratch (depth, tile_m, width)

    j = pl.program_id(1)

    @pl.when(j == 0)
    def _init():
        # Input-side gate chain: computed once per M tile (f32), cached
        # un-transposed so every later matmul is already in standard
        # orientation (no XLU transposes).
        gate = jnp.dot(inp_ref[...], w_refs[0][...],
                       preferred_element_type=jnp.float32)          # (tm, width)
        isc_ref[0] = jax.nn.sigmoid(beta * gate).astype(isc_ref.dtype)
        for l in range(1, depth):
            gate = jnp.dot(gate, w_refs[l][...],
                           preferred_element_type=jnp.float32)
            isc_ref[l] = jax.nn.sigmoid(beta * gate).astype(isc_ref.dtype)
        out_ref[...] = jnp.zeros_like(out_ref)

    # Per-layer kernel blocks (tm, tn) = isc_l @ dsc_l, Hadamard product.
    # alphas and the 1/width normalization are already folded into dsc in the
    # wrapper, so the product block is (K .* alphas-broadcast).
    blk = jnp.dot(isc_ref[0], dsc_ref[0],
                  preferred_element_type=hadamard_dtype)
    for l in range(1, depth):
        blk = blk * jnp.dot(isc_ref[l], dsc_ref[l],
                            preferred_element_type=hadamard_dtype)

    # preds tile contribution: lane-reduce over N (XLU), accumulate in f32
    # into the resident output block.
    out_ref[...] += jnp.sum(blk.astype(jnp.float32), axis=1, keepdims=True)


def _data_gate_scores_t(data, gating_layers, alphas, beta, inv_width, n_pad,
                        score_dtype):
    """Per-layer data gate scores, transposed & padded to (depth, width, n_pad).

    alphas are folded into layer 0 (scale along N); 1/width is folded into
    layers 1..depth-1 — both done once in f32 before the cast.
    """
    n = data.shape[0]
    gate = jnp.dot(data, gating_layers[0], preferred_element_type=jnp.float32)
    scores = [jax.nn.sigmoid(beta * gate) * alphas[:, None]]
    for w in gating_layers[1:]:
        gate = jnp.dot(gate, w, preferred_element_type=jnp.float32)
        scores.append(jax.nn.sigmoid(beta * gate) * inv_width)
    s = jnp.stack(scores, axis=0)                        # (depth, N, width)
    s = jnp.pad(s, ((0, 0), (0, n_pad - n), (0, 0)))     # zero pad -> 0 contrib
    s = jnp.transpose(s, (0, 2, 1))                      # (depth, width, n_pad)
    return s.astype(score_dtype)


def _vmem_budget_bytes(tm, tn, depth, width, dim_in, gating_layers,
                       score_dtype, hadamard_dtype):
    """Rough (generous) VMEM footprint estimate -> scoped vmem limit."""
    sb = jnp.dtype(score_dtype).itemsize
    hb = jnp.dtype(hadamard_dtype).itemsize
    bytes_inp = 2 * tm * _round_up(dim_in, 128) * 4                 # dbl-buf
    bytes_w = 2 * sum(_round_up(w.shape[0], 8) * _round_up(w.shape[1], 128) * 4
                      for w in gating_layers)
    bytes_dsc = 2 * depth * _round_up(width, 16) * tn * sb          # dbl-buf
    bytes_out = 2 * tm * 128 * 4
    bytes_isc = depth * tm * _round_up(width, 128) * sb
    # dot outputs + running product (hadamard dtype) + one f32 cast for reduce
    bytes_tmp = (depth + 1) * tm * tn * hb + 2 * tm * tn * 4
    total = (bytes_inp + bytes_w + bytes_dsc + bytes_out + bytes_isc
             + bytes_tmp)
    return min(100 * 1024 * 1024, max(32 * 1024 * 1024, int(total * 1.25)))


def dlgn_forward(inp, data, gating_layers, alphas, *, beta=4.0, width=None,
                 tile_m=1024, tile_n=1024, score_dtype=jnp.bfloat16,
                 hadamard_dtype=None):
    """Pallas implementation of DLGN_Kernel.forward (feat='cf', BN=False).

    score_dtype=jnp.bfloat16 (default) trades ~depth*2^-8 relative error for
    bf16-native MXU/VPU throughput; pass score_dtype=jnp.float32 for the
    numerically exact path.  On v5e (no bf16 VPU) consider
    hadamard_dtype=jnp.float32.
    """
    m, dim_in = inp.shape
    n = data.shape[0]
    depth = len(gating_layers)
    if width is None:
        width = gating_layers[0].shape[1]
    if hadamard_dtype is None:
        hadamard_dtype = score_dtype

    m_pad = _round_up(m, 128)
    n_pad = _round_up(n, 128)
    # Keep >= 2 M blocks when possible so megacore / v7x 2-TC sharding works.
    tm = _choose_tile(m_pad, tile_m, prefer_blocks=2)
    tn = _choose_tile(n_pad, tile_n)

    gating_layers = [w.astype(jnp.float32) for w in gating_layers]
    inp_p = jnp.pad(inp.astype(jnp.float32), ((0, m_pad - m), (0, 0)))
    dsc = _data_gate_scores_t(data.astype(jnp.float32), gating_layers,
                              alphas.astype(jnp.float32), float(beta),
                              1.0 / float(width), n_pad, score_dtype)

    kernel_fn = functools.partial(_dlgn_kernel, depth=depth, beta=float(beta),
                                  hadamard_dtype=hadamard_dtype)

    def _im_inp(i, j):
        return (i, 0)

    def _im_full2(i, j):
        return (0, 0)

    def _im_dsc(i, j):
        return (0, 0, j)

    def _im_out(i, j):
        return (i, 0)

    in_specs = [pl.BlockSpec((tm, dim_in), _im_inp)]
    in_specs += [pl.BlockSpec(w.shape, _im_full2) for w in gating_layers]
    in_specs += [pl.BlockSpec((depth, width, tn), _im_dsc)]
    out_spec = pl.BlockSpec((tm, 1), _im_out)

    vmem_limit = _vmem_budget_bytes(tm, tn, depth, width, dim_in,
                                    gating_layers, score_dtype, hadamard_dtype)

    out = pl.pallas_call(
        kernel_fn,
        out_shape=jax.ShapeDtypeStruct((m_pad, 1), jnp.float32),
        grid_spec=pltpu.PrefetchScalarGridSpec(
            num_scalar_prefetch=0,
            grid=(m_pad // tm, n_pad // tn),
            in_specs=in_specs,
            out_specs=out_spec,
            scratch_shapes=[pltpu.VMEM((depth, tm, width), score_dtype)],
        ),
        compiler_params=pltpu.CompilerParams(
            dimension_semantics=("parallel", "arbitrary"),
            vmem_limit_bytes=vmem_limit,
        ),
    )(inp_p, *gating_layers, dsc)
    return out[:m, 0]


def dlgn_forward_ref(inp, data, gating_layers, alphas, *, beta=4.0, width=None):
    """Pure-JAX reference matching the PyTorch forward (feat='cf', BN=False)."""
    if width is None:
        width = gating_layers[0].shape[1]
    dg = data @ gating_layers[0]
    ig = inp @ gating_layers[0]
    ds = jax.nn.sigmoid(beta * dg)
    is_ = jax.nn.sigmoid(beta * ig)
    K = is_ @ ds.T
    for i in range(1, len(gating_layers)):
        dg = dg @ gating_layers[i]
        ig = ig @ gating_layers[i]
        ds = jax.nn.sigmoid(beta * dg)
        is_ = jax.nn.sigmoid(beta * ig)
        K = K * (is_ @ ds.T / width)
    return K @ alphas


if __name__ == "__main__":
    # Small deterministic config consistent with the module (feat='cf',
    # BN=False, alpha_init='random'). Sizes chosen so both M and N need
    # padding and the M axis has multiple tiles.
    num_data, dim_in, width, depth, beta = 300, 16, 32, 3, 4.0
    M = 384

    key = jax.random.PRNGKey(0)
    keys = jax.random.split(key, depth + 3)

    sigma = 1.0 / jnp.sqrt(width)
    gating_layers = []
    for i in range(depth):
        shape = (dim_in if i == 0 else width, width)
        gating_layers.append(
            (sigma * jax.random.normal(keys[i], shape)).astype(jnp.float32))
    alphas = (jax.random.normal(keys[depth], (num_data,))
              / jnp.sqrt(num_data)).astype(jnp.float32)

    inp = jax.random.normal(keys[depth + 1], (M, dim_in), dtype=jnp.float32)
    data = jax.random.normal(keys[depth + 2], (num_data, dim_in),
                             dtype=jnp.float32)

    preds_ref = dlgn_forward_ref(inp, data, gating_layers, alphas,
                                 beta=beta, width=width)

    # 1) f32 score path — matches the module numerics closely.
    preds_f32 = dlgn_forward(inp, data, gating_layers, alphas,
                             beta=beta, width=width,
                             score_dtype=jnp.float32)
    preds_f32 = jax.block_until_ready(preds_f32)
    assert preds_f32.shape == (M,)
    assert jnp.allclose(preds_f32, preds_ref, atol=5e-3, rtol=5e-3), (
        "f32 path mismatch vs reference")

    # 2) bf16 score path (default; faster on bf16-native MXUs) — check
    #    relative L2 error (robust for the reduced-precision path).
    preds_bf16 = dlgn_forward(inp, data, gating_layers, alphas,
                              beta=beta, width=width)
    preds_bf16 = jax.block_until_ready(preds_bf16)
    assert preds_bf16.shape == (M,)
    rel_err = float(jnp.linalg.norm(preds_bf16 - preds_ref)
                    / (jnp.linalg.norm(preds_ref) + 1e-12))
    assert rel_err < 5e-2, f"bf16 path rel L2 error too large: {rel_err}"

    print("KERNEL_OK")
</pallas_src>

<mosaic_0001>
module attributes {stable_mosaic.version = 11 : i64} {
  func.func @_dlgn_kernel(%arg0: i32, %arg1: i32, %arg2: memref<128x16xf32, #tpu.memory_space<vmem>>, %arg3: memref<16x32xf32, #tpu.memory_space<vmem>>, %arg4: memref<32x32xf32, #tpu.memory_space<vmem>>, %arg5: memref<32x32xf32, #tpu.memory_space<vmem>>, %arg6: memref<3x32x384xf32, #tpu.memory_space<vmem>>, %arg7: memref<128x1xf32, #tpu.memory_space<vmem>>, %arg8: memref<3x128x32xf32, #tpu.memory_space<vmem>>) attributes {dimension_semantics = [#tpu.dimension_semantics<parallel>, #tpu.dimension_semantics<arbitrary>], iteration_bounds = array<i64: 3, 1>, scalar_prefetch = 0 : i64, scratch_operands = 1 : i64, tpu.core_type = #tpu.core_type<tc>, window_params = [{transform_indices = @transform_0, window_bounds = array<i64: 128, 16>}, {pipeline_mode = #tpu.pipeline_mode<synchronous>, transform_indices = @transform_1, window_bounds = array<i64: 16, 32>}, {pipeline_mode = #tpu.pipeline_mode<synchronous>, transform_indices = @transform_2, window_bounds = array<i64: 32, 32>}, {pipeline_mode = #tpu.pipeline_mode<synchronous>, transform_indices = @transform_3, window_bounds = array<i64: 32, 32>}, {transform_indices = @transform_4, window_bounds = array<i64: 3, 32, 384>}, {transform_indices = @transform_5, window_bounds = array<i64: 128, 1>}]} {
    %c0_i32 = arith.constant 0 : i32
    %0 = arith.cmpi eq, %arg1, %c0_i32 : i32
    %1 = arith.extui %0 : i1 to i32
    %c0_i32_0 = arith.constant 0 : i32
    %2 = arith.cmpi ne, %1, %c0_i32_0 : i32
    scf.if %2 {
      %c0_23 = arith.constant 0 : index
      %c0_24 = arith.constant 0 : index
      %25 = vector.load %arg2[%c0_23, %c0_24] : memref<128x16xf32, #tpu.memory_space<vmem>>, vector<128x16xf32>
      %c0_25 = arith.constant 0 : index
      %c0_26 = arith.constant 0 : index
      %26 = vector.load %arg3[%c0_25, %c0_26] : memref<16x32xf32, #tpu.memory_space<vmem>>, vector<16x32xf32>
      %cst_27 = arith.constant dense<0.000000e+00> : vector<128x32xf32>
      %27 = tpu.matmul %25, %26, %cst_27 {dimension_numbers = #tpu.dot_dimension_numbers<[1], [0], [0], [1], [0, 0, 1, 1], [], []>} : vector<128x16xf32>, vector<16x32xf32>, vector<128x32xf32> -> vector<128x32xf32>
      %cst_28 = arith.constant 4.000000e+00 : f32
      %28 = vector.broadcast %cst_28 : f32 to vector<128x32xf32>
      %29 = arith.mulf %28, %27 : vector<128x32xf32>
      %30 = arith.negf %29 : vector<128x32xf32>
      %31 = math.exp %30 : vector<128x32xf32>
      %cst_29 = arith.constant 1.000000e+00 : f32
      %32 = vector.broadcast %cst_29 : f32 to vector<128x32xf32>
      %33 = arith.addf %32, %31 : vector<128x32xf32>
      %34 = arith.divf %32, %33 : vector<128x32xf32>
      %c0_30 = arith.constant 0 : index
      %c0_31 = arith.constant 0 : index
      %c0_32 = arith.constant 0 : index
      %35 = vector.load %arg8[%c0_30, %c0_31, %c0_32] : memref<3x128x32xf32, #tpu.memory_space<vmem>>, vector<1x128x32xf32>
      %36 = vector.shape_cast %35 : vector<1x128x32xf32> to vector<128x32xf32>
      %37 = vector.shape_cast %34 : vector<128x32xf32> to vector<1x128x32xf32>
      tpu.vector_store %arg8[%c0_30, %c0_31, %c0_32], %37 {strides = array<i32>} : memref<3x128x32xf32, #tpu.memory_space<vmem>>, vector<1x128x32xf32>,
      %c0_33 = arith.constant 0 : index
      %c0_34 = arith.constant 0 : index
      %38 = vector.load %arg4[%c0_33, %c0_34] : memref<32x32xf32, #tpu.memory_space<vmem>>, vector<32x32xf32>
      %cst_35 = arith.constant dense<0.000000e+00> : vector<128x32xf32>
      %39 = tpu.matmul %27, %38, %cst_35 {dimension_numbers = #tpu.dot_dimension_numbers<[1], [0], [0], [1], [0, 0, 1, 1], [], []>} : vector<128x32xf32>, vector<32x32xf32>, vector<128x32xf32> -> vector<128x32xf32>
      %cst_36 = arith.constant 4.000000e+00 : f32
      %40 = vector.broadcast %cst_36 : f32 to vector<128x32xf32>
      %41 = arith.mulf %40, %39 : vector<128x32xf32>
      %42 = arith.negf %41 : vector<128x32xf32>
      %43 = math.exp %42 : vector<128x32xf32>
      %cst_37 = arith.constant 1.000000e+00 : f32
      %44 = vector.broadcast %cst_37 : f32 to vector<128x32xf32>
      %45 = arith.addf %44, %43 : vector<128x32xf32>
      %46 = arith.divf %44, %45 : vector<128x32xf32>
      %c1_38 = arith.constant 1 : index
      %c0_39 = arith.constant 0 : index
      %c0_40 = arith.constant 0 : index
      %47 = vector.load %arg8[%c1_38, %c0_39, %c0_40] : memref<3x128x32xf32, #tpu.memory_space<vmem>>, vector<1x128x32xf32>
      %48 = vector.shape_cast %47 : vector<1x128x32xf32> to vector<128x32xf32>
      %49 = vector.shape_cast %46 : vector<128x32xf32> to vector<1x128x32xf32>
      tpu.vector_store %arg8[%c1_38, %c0_39, %c0_40], %49 {strides = array<i32>} : memref<3x128x32xf32, #tpu.memory_space<vmem>>, vector<1x128x32xf32>,
      %c0_41 = arith.constant 0 : index
      %c0_42 = arith.constant 0 : index
      %50 = vector.load %arg5[%c0_41, %c0_42] : memref<32x32xf32, #tpu.memory_space<vmem>>, vector<32x32xf32>
      %cst_43 = arith.constant dense<0.000000e+00> : vector<128x32xf32>
      %51 = tpu.matmul %39, %50, %cst_43 {dimension_numbers = #tpu.dot_dimension_numbers<[1], [0], [0], [1], [0, 0, 1, 1], [], []>} : vector<128x32xf32>, vector<32x32xf32>, vector<128x32xf32> -> vector<128x32xf32>
      %cst_44 = arith.constant 4.000000e+00 : f32
      %52 = vector.broadcast %cst_44 : f32 to vector<128x32xf32>
      %53 = arith.mulf %52, %51 : vector<128x32xf32>
      %54 = arith.negf %53 : vector<128x32xf32>
      %55 = math.exp %54 : vector<128x32xf32>
      %cst_45 = arith.constant 1.000000e+00 : f32
      %56 = vector.broadcast %cst_45 : f32 to vector<128x32xf32>
      %57 = arith.addf %56, %55 : vector<128x32xf32>
      %58 = arith.divf %56, %57 : vector<128x32xf32>
      %c2_46 = arith.constant 2 : index
      %c0_47 = arith.constant 0 : index
      %c0_48 = arith.constant 0 : index
      %59 = vector.load %arg8[%c2_46, %c0_47, %c0_48] : memref<3x128x32xf32, #tpu.memory_space<vmem>>, vector<1x128x32xf32>
      %60 = vector.shape_cast %59 : vector<1x128x32xf32> to vector<128x32xf32>
      %61 = vector.shape_cast %58 : vector<128x32xf32> to vector<1x128x32xf32>
      tpu.vector_store %arg8[%c2_46, %c0_47, %c0_48], %61 {strides = array<i32>} : memref<3x128x32xf32, #tpu.memory_space<vmem>>, vector<1x128x32xf32>,
      %cst_49 = arith.constant 0.000000e+00 : f32
      %62 = vector.broadcast %cst_49 : f32 to vector<128x1xf32>
      %c0_50 = arith.constant 0 : index
      %c0_51 = arith.constant 0 : index
      %63 = vector.load %arg7[%c0_50, %c0_51] : memref<128x1xf32, #tpu.memory_space<vmem>>, vector<128x1xf32>
      tpu.vector_store %arg7[%c0_50, %c0_51], %62 {strides = array<i32>} : memref<128x1xf32, #tpu.memory_space<vmem>>, vector<128x1xf32>,
    } else {
    }
    %c0 = arith.constant 0 : index
    %c0_1 = arith.constant 0 : index
    %c0_2 = arith.constant 0 : index
    %3 = vector.load %arg8[%c0, %c0_1, %c0_2] : memref<3x128x32xf32, #tpu.memory_space<vmem>>, vector<1x128x32xf32>
    %4 = vector.shape_cast %3 : vector<1x128x32xf32> to vector<128x32xf32>
    %c0_3 = arith.constant 0 : index
    %c0_4 = arith.constant 0 : index
    %c0_5 = arith.constant 0 : index
    %5 = vector.load %arg6[%c0_3, %c0_4, %c0_5] : memref<3x32x384xf32, #tpu.memory_space<vmem>>, vector<1x32x384xf32>
    %6 = vector.shape_cast %5 : vector<1x32x384xf32> to vector<32x384xf32>
    %cst = arith.constant dense<0.000000e+00> : vector<128x384xf32>
    %7 = tpu.matmul %4, %6, %cst {dimension_numbers = #tpu.dot_dimension_numbers<[1], [0], [0], [1], [0, 0, 1, 1], [], []>} : vector<128x32xf32>, vector<32x384xf32>, vector<128x384xf32> -> vector<128x384xf32>
    %c1 = arith.constant 1 : index
    %c0_6 = arith.constant 0 : index
    %c0_7 = arith.constant 0 : index
    %8 = vector.load %arg8[%c1, %c0_6, %c0_7] : memref<3x128x32xf32, #tpu.memory_space<vmem>>, vector<1x128x32xf32>
    %9 = vector.shape_cast %8 : vector<1x128x32xf32> to vector<128x32xf32>
    %c1_8 = arith.constant 1 : index
    %c0_9 = arith.constant 0 : index
    %c0_10 = arith.constant 0 : index
    %10 = vector.load %arg6[%c1_8, %c0_9, %c0_10] : memref<3x32x384xf32, #tpu.memory_space<vmem>>, vector<1x32x384xf32>
    %11 = vector.shape_cast %10 : vector<1x32x384xf32> to vector<32x384xf32>
    %cst_11 = arith.constant dense<0.000000e+00> : vector<128x384xf32>
    %12 = tpu.matmul %9, %11, %cst_11 {dimension_numbers = #tpu.dot_dimension_numbers<[1], [0], [0], [1], [0, 0, 1, 1], [], []>} : vector<128x32xf32>, vector<32x384xf32>, vector<128x384xf32> -> vector<128x384xf32>
    %13 = arith.mulf %7, %12 : vector<128x384xf32>
    %c2 = arith.constant 2 : index
    %c0_12 = arith.constant 0 : index
    %c0_13 = arith.constant 0 : index
    %14 = vector.load %arg8[%c2, %c0_12, %c0_13] : memref<3x128x32xf32, #tpu.memory_space<vmem>>, vector<1x128x32xf32>
    %15 = vector.shape_cast %14 : vector<1x128x32xf32> to vector<128x32xf32>
    %c2_14 = arith.constant 2 : index
    %c0_15 = arith.constant 0 : index
    %c0_16 = arith.constant 0 : index
    %16 = vector.load %arg6[%c2_14, %c0_15, %c0_16] : memref<3x32x384xf32, #tpu.memory_space<vmem>>, vector<1x32x384xf32>
    %17 = vector.shape_cast %16 : vector<1x32x384xf32> to vector<32x384xf32>
    %cst_17 = arith.constant dense<0.000000e+00> : vector<128x384xf32>
    %18 = tpu.matmul %15, %17, %cst_17 {dimension_numbers = #tpu.dot_dimension_numbers<[1], [0], [0], [1], [0, 0, 1, 1], [], []>} : vector<128x32xf32>, vector<32x384xf32>, vector<128x384xf32> -> vector<128x384xf32>
    %19 = arith.mulf %13, %18 : vector<128x384xf32>
    %c0_18 = arith.constant 0 : index
    %c0_19 = arith.constant 0 : index
    %20 = vector.load %arg7[%c0_18, %c0_19] : memref<128x1xf32, #tpu.memory_space<vmem>>, vector<128x1xf32>
    %cst_20 = arith.constant dense<0.000000e+00> : vector<128xf32>
    %21 = vector.multi_reduction <add>, %19, %cst_20 [1] : vector<128x384xf32> to vector<128xf32>
    %22 = vector.shape_cast %21 : vector<128xf32> to vector<128x1xf32>
    %23 = arith.addf %20, %22 : vector<128x1xf32>
    %c0_21 = arith.constant 0 : index
    %c0_22 = arith.constant 0 : index
    %24 = vector.load %arg7[%c0_21, %c0_22] : memref<128x1xf32, #tpu.memory_space<vmem>>, vector<128x1xf32>
    tpu.vector_store %arg7[%c0_21, %c0_22], %23 {strides = array<i32>} : memref<128x1xf32, #tpu.memory_space<vmem>>, vector<128x1xf32>,
    return
  }
  func.func @transform_0(%arg0: i32, %arg1: i32) -> (i32, i32) {
    %c0_i32 = arith.constant 0 : i32
    %c0_i32_0 = arith.constant 0 : i32
    return %arg0, %c0_i32 : i32, i32
  }
  func.func @transform_1(%arg0: i32, %arg1: i32) -> (i32, i32) {
    %c0_i32 = arith.constant 0 : i32
    %c0_i32_0 = arith.constant 0 : i32
    %c0_i32_1 = arith.constant 0 : i32
    return %c0_i32, %c0_i32_0 : i32, i32
  }
  func.func @transform_2(%arg0: i32, %arg1: i32) -> (i32, i32) {
    %c0_i32 = arith.constant 0 : i32
    %c0_i32_0 = arith.constant 0 : i32
    %c0_i32_1 = arith.constant 0 : i32
    return %c0_i32, %c0_i32_0 : i32, i32
  }
  func.func @transform_3(%arg0: i32, %arg1: i32) -> (i32, i32) {
    %c0_i32 = arith.constant 0 : i32
    %c0_i32_0 = arith.constant 0 : i32
    %c0_i32_1 = arith.constant 0 : i32
    return %c0_i32, %c0_i32_0 : i32, i32
  }
  func.func @transform_4(%arg0: i32, %arg1: i32) -> (i32, i32, i32) {
    %c0_i32 = arith.constant 0 : i32
    %c0_i32_0 = arith.constant 0 : i32
    %c0_i32_1 = arith.constant 0 : i32
    return %c0_i32, %c0_i32_0, %arg1 : i32, i32, i32
  }
  func.func @transform_5(%arg0: i32, %arg1: i32) -> (i32, i32) {
    %c0_i32 = arith.constant 0 : i32
    %c0_i32_0 = arith.constant 0 : i32
    return %arg0, %c0_i32 : i32, i32
  }
}

</mosaic_0001>

<bundles_post_ra>
// kernel: tpu_custom_call.1
= control target key start
LH: loop header
LB: loop body
LE: loop exit
PB: predicated region body
PF: predicated region fallthrough
CT: control target
= control target key end

     0   :  { %s3590_s18 = smov 0   ;;  %s3592_s19 = smov 0   ;;  %s4480_s0 = inlined_call_operand.vmem [shape: f32[384,16], index: 0, kind: input, shape index: {}]   ;;  %s4481_s1 = inlined_call_operand.vmem [shape: f32[16,32], index: 1, kind: input, shape index: {}]   ;;  %s4482_s2 = inlined_call_operand.vmem [shape: f32[32,32], index: 2, kind: input, shape index: {}]   ;;  %s4483_s3 = inlined_call_operand.vmem [shape: f32[32,32], index: 3, kind: input, shape index: {}]   ;;  %s4484_s4 = inlined_call_operand.vmem [shape: f32[3,32,384], index: 4, kind: input, shape index: {}]   ;;  %s4485_s5 = inlined_call_operand.vmem [shape: f32[384,1], index: 5, kind: output, shape index: {}]  }
   0x1   :  { %s3594_s20 = smov 0  }
   0x2 LB: > { %s27_s21 = sadd.s32 1, %s3553_s19  ;;  %p2721_p0 = scmp.ge.s32.totalorder %s3557_s20, 1  ;;  %s3557_s20 = sphi %s3594_s20, %s15_s20   ;;  %s3553_s19 = sphi %s3592_s19, %s4494_s19   ;;  %s3549_s18 = sphi %s3590_s18, %s4493_s18  }
   0x3   : > { %p29_p1 = scmp.ge.s32.totalorder %s27_s21, 3  ;;  %p211_p2 = scmp.lt.s32.totalorder %s3557_s20, 4 }
   0x5   : > { %s4496_s21 = smov (%p29_p1, %s27_s21), 0  ;;  %p212_p3 = pnand %p2721_p0, %p211_p2 }
   0x7   : > { %215 = sbr.rel (%p212_p3) target bundleno = 1123 (0x463), region = 40 }
   0xe   : > { %v282_v0 = vld [vmem:[%s4481_s1] sm:$0xff]  ;;  %v283_v1 = vld [vmem:[%s4481_s1 + $0x8] sm:$0xff]  ;;  %s2722_s26 = sshll.u32 %s3549_s18, 4  ;;  %v609_v5 = vld [vmem:[%s4482_s2 + $0x10] sm:$0xff]  ;;  %vm284_vm0 = vcmask 130048   ;;  %vm590_vm1 = vcmask 261120  }
   0xf   : > { %v607_v2 = vld [vmem:[%s4482_s2] sm:$0xff]  ;;  %v3250_v3 = vpack.c.bf16 %v283_v1, %v282_v0  ;;  %p245_p4 = scmp.lt.s32.totalorder %s2722_s26, 47  ;;  %v608_v4 = vld [vmem:[%s4482_s2 + $0x8] sm:$0xff]  ;;  %v610_v6 = vld [vmem:[%s4482_s2 + $0x18] sm:$0xff]  ;;  %vm1259_vm2 = vcmask 7168  }
  0x10   : > { %v3254_v7 = vpack.c.bf16 %v608_v4, %v607_v2  ;;  %v3258_v8 = vpack.c.bf16 %v610_v6, %v609_v5  ;;  %v1293_v25 = vld [vmem:[%s4484_s4 + $0x8] sm:$0xff]  ;;  %v1296_v26 = vld [vmem:[%s4484_s4 + $0x20] sm:$0xff]  ;;  %v935_v30 = vld [vmem:[%s4483_s3 + $0x10] sm:$0xff] }
  0x11   : > { %3251 = vmatprep.subr.bf16.mxu0 %v3250_v3  ;;  %s4498_s26 = smov (!%p245_p4, %s2722_s26), 47  ;;  %v3270_v27 = vpack.c.bf16 %v1296_v26, %v1293_v25  ;;  %v933_v28 = vld [vmem:[%s4483_s3] sm:$0xff]  ;;  %v934_v29 = vld [vmem:[%s4483_s3 + $0x8] sm:$0xff]  ;;  %v936_v32 = vld [vmem:[%s4483_s3 + $0x18] sm:$0xff] }
  0x12   : > { %3253 = vmatpush3.bf16.msra.mxu0 %v3250_v3  ;;  %3255 = vmatprep.subr.bf16.mxu1 %v3254_v7  ;;  %s2723_s10 = sshll.u32 %s4498_s26, 3  ;;  %v3262_v31 = vpack.c.bf16 %v934_v29, %v933_v28  ;;  %v3266_v33 = vpack.c.bf16 %v936_v32, %v935_v30  ;;  %v1292_v34 = vld [vmem:[%s4484_s4] sm:$0xff]  ;;  %v1295_v35 = vld [vmem:[%s4484_s4 + $0x18] sm:$0xff]  ;;  %v1302_v37 = vld [vmem:[%s4484_s4 + $0x50] sm:$0xff] }
  0x13   : > { %3257 = vmatpush3.bf16.msra.mxu1 %v3254_v7  ;;  %s3634_s13 = scalar_lea.vmem %s4480_s0, %s2723_s10  ;;  %v1299_v36 = vld [vmem:[%s4484_s4 + $0x38] sm:$0xff]  ;;  %v3272_v39 = vpack.c.bf16 %v1295_v35, %v1292_v34  ;;  %v1298_v43 = vld [vmem:[%s4484_s4 + $0x30] sm:$0xff]  ;;  %v1301_v44 = vld [vmem:[%s4484_s4 + $0x48] sm:$0xff]  ;;  %s4325_s16 = scalar_lea.vmem %s4485_s5, %s2723_s10 }
  0x14   : > { %3259 = vmatprep.subr.bf16.mxu1 %v3258_v8  ;;  %v266_v9 = vld [vmem:[%s3634_s13] sm:$0xff]  ;;  %v267_v10 = vld [vmem:[%s3634_s13 + $0x8] sm:$0xff]  ;;  %v268_v11 = vld [vmem:[%s3634_s13 + $0x10] sm:$0xff]  ;;  %3263 = vmatprep.subr.bf16.mxu0 %v3262_v31  ;;  %v3274_v42 = vpack.c.bf16 %v1302_v37, %v1299_v36  ;;  %v3276_v49 = vpack.c.bf16 %v1301_v44, %v1298_v43 }
  0x15   : > { %3066 = vmatprep.mubr.msk.f32.mxu0 %vm284_vm0, %v266_v9  ;;  %v269_v12 = vld [vmem:[%s3634_s13 + $0x18] sm:$0xff]  ;;  %v270_v13 = vld [vmem:[%s3634_s13 + $0x20] sm:$0xff]  ;;  %v271_v14 = vld [vmem:[%s3634_s13 + $0x28] sm:$0xff] }
  0x16   : > { %3067 = vmatmul.mubr.msk.f32.vlgmr.msra.gmra.mrb[0].mxu0 %vm284_vm0, %v267_v10  ;;  %v272_v15 = vld [vmem:[%s3634_s13 + $0x30] sm:$0xff]  ;;  %v273_v16 = vld [vmem:[%s3634_s13 + $0x38] sm:$0xff]  ;;  %v274_v17 = vld [vmem:[%s3634_s13 + $0x40] sm:$0xff] }
  0x17   : > { %3261 = vmatpush3.bf16.msra.mxu1 %v3258_v8  ;;  %3069 = vmatprep.mubr.msk.f32.mxu0 %vm284_vm0, %v268_v11  ;;  %v275_v18 = vld [vmem:[%s3634_s13 + $0x48] sm:$0xff]  ;;  %v276_v19 = vld [vmem:[%s3634_s13 + $0x50] sm:$0xff]  ;;  %v277_v20 = vld [vmem:[%s3634_s13 + $0x58] sm:$0xff] }
  0x18   : > { %v278_v21 = vld [vmem:[%s3634_s13 + $0x60] sm:$0xff]  ;;  %v279_v22 = vld [vmem:[%s3634_s13 + $0x68] sm:$0xff]  ;;  %v280_v23 = vld [vmem:[%s3634_s13 + $0x70] sm:$0xff]  ;;  %3271 = vmatprep.subr.bf16.mxu1 %v3270_v27  ;;  %3265 = vmatpush3.bf16.msra.mxu0 %v3262_v31 }
  0x19   : > { %v281_v24 = vld [vmem:[%s3634_s13 + $0x78] sm:$0xff]  ;;  %3267 = vmatprep.subr.bf16.mxu0 %v3266_v33 }
  0x1a   : > { %3070 = vmatmul.mubr.msk.f32.gmra.mrb[2].mxu0 %vm284_vm0, %v269_v12 }
  0x1b   : > { %3072 = vmatprep.mubr.msk.f32.mxu0 %vm284_vm0, %v270_v13 }
  0x1c   : > { %3269 = vmatpush3.bf16.msra.mxu0 %v3266_v33 }
  0x1e   : > { %3073 = vmatmul.mubr.msk.f32.gmra.mrb[4].mxu0 %vm284_vm0, %v271_v14 }
  0x1f   : > { %3075 = vmatprep.mubr.msk.f32.mxu0 %vm284_vm0, %v272_v15 }
  0x22   : > { %3076 = vmatmul.mubr.msk.f32.gmra.mrb[6].mxu0 %vm284_vm0, %v273_v16 }
  0x23   : > { %3078 = vmatprep.mubr.msk.f32.mxu0 %vm284_vm0, %v274_v17 }
  0x26   : > { %3079 = vmatmul.mubr.msk.f32.gmra.mrb[8].mxu0 %vm284_vm0, %v275_v18 }
  0x27   : > { %3081 = vmatprep.mubr.msk.f32.mxu0 %vm284_vm0, %v276_v19 }
  0x2a   : > { %3082 = vmatmul.mubr.msk.f32.gmra.mrb[10].mxu0 %vm284_vm0, %v277_v20 }
  0x2b   : > { %3084 = vmatprep.mubr.msk.f32.mxu0 %vm284_vm0, %v278_v21 }
  0x2e   : > { %3085 = vmatmul.mubr.msk.f32.gmra.mrb[12].mxu0 %vm284_vm0, %v279_v22 }
  0x2f   : > { %3087 = vmatprep.mubr.msk.f32.mxu0 %vm284_vm0, %v280_v23 }
  0x32   : > { %3088 = vmatmul.mubr.msk.f32.gmra.mrb[14].mxu0 %vm284_vm0, %v281_v24 }
  0xe9   : > { %v3068_v38 = vpop.f32.mrb[0].mxu0 }
  0xea   : > { %v2743_v40 = vmul.f32 -4.0, %v3068_v38  ;;  %v399_v41 = vpop.f32.mrb[1].mxu0 }
  0xeb   : > { %v2742_v45 = vmul.f32 -4.0, %v399_v41  ;;  %3098 = vmatprep.mubr.msk.f32.mxu1 %vm590_vm1, %v399_v41 }
  0xec   : > { %v512_v46 = vmul.f32 1.442695, %v2743_v40  ;;  %3099 = vmatmul.mubr.msk.f32.vlgmr.msra.gmra.mrb[0].mxu1 %vm590_vm1, %v3068_v38 }
  0xed   : > { %v510_v47 = vmul.f32 1.442695, %v2742_v45  ;;  %v3071_v48 = vpop.f32.mrb[2].mxu0  ;;  %3273 = vmatpush1.bf16.msra.mxu1 %v3272_v39 }
  0xee   : > { %3343 = vpow2.f32 %v512_v46  ;;  %v2745_v50 = vmul.f32 -4.0, %v3071_v48  ;;  %v409_v51 = vpop.f32.mrb[3].mxu0  ;;  %3275 = vmatprep.subr.bf16.mxu1 %v3274_v42 }
  0xef   : > { %3345 = vpow2.f32 %v510_v47  ;;  %v2744_v52 = vmul.f32 -4.0, %v409_v51  ;;  %3101 = vmatprep.mubr.msk.f32.mxu1 %vm590_vm1, %v409_v51 }
  0xf0   : > { %v516_v53 = vmul.f32 1.442695, %v2745_v50  ;;  %3102 = vmatmul.mubr.msk.f32.gmra.mrb[2].mxu1 %vm590_vm1, %v3071_v48  ;;  %v4486_v48 = vmov 0.0  }
  0xf1   : > { %v514_v54 = vmul.f32 1.442695, %v2744_v52  ;;  %v3074_v55 = vpop.f32.mrb[4].mxu0  ;;  %3277 = vmatpush1.bf16.msra.mxu1 %v3276_v49 }
  0xf2   : > { %3347 = vpow2.f32 %v516_v53  ;;  %v2747_v56 = vmul.f32 -4.0, %v3074_v55  ;;  %v419_v57 = vpop.f32.mrb[5].mxu0 }
  0xf3   : > { %3349 = vpow2.f32 %v514_v54  ;;  %v2746_v58 = vmul.f32 -4.0, %v419_v57  ;;  %3104 = vmatprep.mubr.msk.f32.mxu1 %vm590_vm1, %v419_v57 }
  0xf4   : > { %v520_v59 = vmul.f32 1.442695, %v2747_v56  ;;  %3105 = vmatmul.mubr.msk.f32.gmra.mrb[4].mxu1 %vm590_vm1, %v3074_v55 }
  0xf5   : > { %v518_v60 = vmul.f32 1.442695, %v2746_v58  ;;  %v3077_v61 = vpop.f32.mrb[6].mxu0 }
  0xf6   : > { %3351 = vpow2.f32 %v520_v59  ;;  %v2749_v62 = vmul.f32 -4.0, %v3077_v61  ;;  %v429_v63 = vpop.f32.mrb[7].mxu0 }
  0xf7   : > { %3353 = vpow2.f32 %v518_v60  ;;  %v2748_v0 = vmul.f32 -4.0, %v429_v63  ;;  %3107 = vmatprep.mubr.msk.f32.mxu1 %vm590_vm1, %v429_v63 }
  0xf8   : > { %v3344_v1 = vpop.eup %3343  ;;  %v524_v2 = vmul.f32 1.442695, %v2749_v62  ;;  %3108 = vmatmul.mubr.msk.f32.gmra.mrb[6].mxu1 %vm590_vm1, %v3077_v61 }
  0xf9   : > { %v3346_v3 = vpop.eup %3345  ;;  %v543_v4 = vadd.f32 1.0, %v3344_v1  ;;  %v522_v5 = vmul.f32 1.442695, %v2748_v0  ;;  %v3080_v6 = vpop.f32.mrb[8].mxu0 }
  0xfa   : > { %v542_v7 = vadd.f32 1.0, %v3346_v3  ;;  %3355 = vpow2.f32 %v524_v2  ;;  %v2751_v8 = vmul.f32 -4.0, %v3080_v6  ;;  %v439_v9 = vpop.f32.mrb[9].mxu0 }
  0xfb   : > { %3357 = vrcp.f32 %v543_v4  ;;  %v2750_v10 = vmul.f32 -4.0, %v439_v9  ;;  %3110 = vmatprep.mubr.msk.f32.mxu1 %vm590_vm1, %v439_v9 }
  0xfc   : > { %v3348_v11 = vpop.eup %3347  ;;  %3359 = vrcp.f32 %v542_v7  ;;  %v528_v12 = vmul.f32 1.442695, %v2751_v8  ;;  %3111 = vmatmul.mubr.msk.f32.gmra.mrb[8].mxu1 %vm590_vm1, %v3080_v6 }
  0xfd   : > { %v3350_v13 = vpop.eup %3349  ;;  %v545_v14 = vadd.f32 1.0, %v3348_v11  ;;  %3361 = vpow2.f32 %v522_v5  ;;  %v526_v15 = vmul.f32 1.442695, %v2750_v10  ;;  %v3083_v16 = vpop.f32.mrb[10].mxu0 }
  0xfe   : > { %v544_v17 = vadd.f32 1.0, %v3350_v13  ;;  %3363 = vpow2.f32 %v528_v12  ;;  %v2753_v18 = vmul.f32 -4.0, %v3083_v16  ;;  %v449_v19 = vpop.f32.mrb[11].mxu0 }
  0xff   : > { %3365 = vrcp.f32 %v545_v14  ;;  %v2752_v20 = vmul.f32 -4.0, %v449_v19  ;;  %3113 = vmatprep.mubr.msk.f32.mxu1 %vm590_vm1, %v449_v19 }
 0x100   : > { %v3352_v21 = vpop.eup %3351  ;;  %3367 = vrcp.f32 %v544_v17  ;;  %v532_v22 = vmul.f32 1.442695, %v2753_v18  ;;  %3114 = vmatmul.mubr.msk.f32.gmra.mrb[10].mxu1 %vm590_vm1, %v3083_v16 }
 0x101   : > { %v3354_v23 = vpop.eup %3353  ;;  %v547_v24 = vadd.f32 1.0, %v3352_v21  ;;  %3369 = vpow2.f32 %v526_v15  ;;  %v530_v25 = vmul.f32 1.442695, %v2752_v20  ;;  %v3086_v26 = vpop.f32.mrb[12].mxu0 }
 0x102   : > { %v546_v27 = vadd.f32 1.0, %v3354_v23  ;;  %3371 = vpow2.f32 %v532_v22  ;;  %v2755_v28 = vmul.f32 -4.0, %v3086_v26  ;;  %v459_v29 = vpop.f32.mrb[13].mxu0 }
 0x103   : > { %3373 = vrcp.f32 %v547_v24  ;;  %v2754_v30 = vmul.f32 -4.0, %v459_v29  ;;  %3116 = vmatprep.mubr.msk.f32.mxu1 %vm590_vm1, %v459_v29  ;;  %v1297_v29 = vld [vmem:[%s4484_s4 + $0x28] sm:$0xff] }
 0x104   : > { %v3356_v31 = vpop.eup %3355  ;;  %3375 = vrcp.f32 %v546_v27  ;;  %v536_v32 = vmul.f32 1.442695, %v2755_v28  ;;  %3117 = vmatmul.mubr.msk.f32.gmra.mrb[12].mxu1 %vm590_vm1, %v3086_v26  ;;  %v1294_v28 = vld [vmem:[%s4484_s4 + $0x10] sm:$0xff] }
 0x105   : > { %v3358_v33 = vpop.eup %3357  ;;  %v549_v34 = vadd.f32 1.0, %v3356_v31  ;;  %3377 = vpow2.f32 %v530_v25  ;;  %v534_v35 = vmul.f32 1.442695, %v2754_v30  ;;  %v3089_v36 = vpop.f32.mrb[14].mxu0  ;;  %v3278_v30 = vpack.c.bf16 %v1297_v29, %v1294_v28  ;;  %v2856_v31 = vld [vmem:[%s4484_s4 + $0x70] sm:$0xff] }
 0x106   : > { %v3360_v37 = vpop.eup %3359  ;;  %592 = vst.msk [vmem:[#allocation2 + $0x8] sm:$0xff] %vm590_vm1, %v3358_v33  ;;  %3379 = vpow2.f32 %v536_v32  ;;  %v2757_v38 = vmul.f32 -4.0, %v3089_v36  ;;  %v469_v39 = vpop.f32.mrb[15].mxu0  ;;  %v2859_v32 = vld [vmem:[%s4484_s4 + $0x88] sm:$0xff] }
 0x107   : > { %v3362_v40 = vpop.eup %3361  ;;  %591 = vst.msk [vmem:[#allocation2] sm:$0xff] %vm590_vm1, %v3360_v37  ;;  %3381 = vrcp.f32 %v549_v34  ;;  %v2756_v41 = vmul.f32 -4.0, %v469_v39  ;;  %3119 = vmatprep.mubr.msk.f32.mxu1 %vm590_vm1, %v469_v39  ;;  %3279 = vmatprep.subr.bf16.mxu0 %v3278_v30  ;;  %v3294_v33 = vpack.c.bf16 %v2859_v32, %v2856_v31  ;;  %v2862_v34 = vld [vmem:[%s4484_s4 + $0xa0] sm:$0xff] }
 0x108   : > { %v3364_v42 = vpop.eup %3363  ;;  %v548_v43 = vadd.f32 1.0, %v3362_v40  ;;  %3383 = vpow2.f32 %v534_v35  ;;  %v540_v44 = vmul.f32 1.442695, %v2757_v38  ;;  %3120 = vmatmul.mubr.msk.f32.gmra.mrb[14].mxu1 %vm590_vm1, %v3089_v36  ;;  %v2865_v35 = vld [vmem:[%s4484_s4 + $0xb8] sm:$0xff]  ;;  %v1300_v37 = vld [vmem:[%s4484_s4 + $0x40] sm:$0xff] }
 0x109   : > { %v3366_v45 = vpop.eup %3365  ;;  %v551_v46 = vadd.f32 1.0, %v3364_v42  ;;  %v538_v47 = vmul.f32 1.442695, %v2756_v41  ;;  %1417 = vmatprep.mubr.f32.mxu1 %v4486_v48  ;;  %3295 = vmatprep.subr.bf16.mxu1 %v3294_v33  ;;  %v3298_v36 = vpack.c.bf16 %v2865_v35, %v2862_v34  ;;  %v1303_v38 = vld [vmem:[%s4484_s4 + $0x58] sm:$0xff] }
 0x10a   : > { %v3368_v49 = vpop.eup %3367  ;;  %594 = vst.msk [vmem:[#allocation2 + $0x18] sm:$0xff] %vm590_vm1, %v3366_v45  ;;  %3385 = vrcp.f32 %v548_v43  ;;  %v3282_v42 = vpack.c.bf16 %v1303_v38, %v1300_v37  ;;  %v2858_v45 = vld [vmem:[%s4484_s4 + $0x80] sm:$0xff] }
 0x10b   : > { %v3370_v50 = vpop.eup %3369  ;;  %593 = vst.msk [vmem:[#allocation2 + $0x10] sm:$0xff] %vm590_vm1, %v3368_v49  ;;  %3387 = vrcp.f32 %v551_v46 }
 0x10c   : > { %v3372_v51 = vpop.eup %3371  ;;  %v550_v52 = vadd.f32 1.0, %v3370_v50  ;;  %3389 = vpow2.f32 %v540_v44  ;;  %v2855_v44 = vld [vmem:[%s4484_s4 + $0x68] sm:$0xff] }
 0x10d   : > { %v3374_v53 = vpop.eup %3373  ;;  %v553_v54 = vadd.f32 1.0, %v3372_v51  ;;  %3391 = vpow2.f32 %v538_v47  ;;  %v3733_v63 = vld [vmem:[#allocation2 + $0x8] sm:$0xff] }
 0x10e   : > { %v3376_v55 = vpop.eup %3375  ;;  %596 = vst.msk [vmem:[#allocation2 + $0x28] sm:$0xff] %vm590_vm1, %v3374_v53  ;;  %3393 = vrcp.f32 %v550_v52  ;;  %v3726_v56 = vld [vmem:[#allocation2] sm:$0xff]  ;;  %v3286_v52 = vpack.c.bf16 %v2858_v45, %v2855_v44 }
 0x10f   : > { %v3378_v57 = vpop.eup %3377  ;;  %595 = vst.msk [vmem:[#allocation2 + $0x20] sm:$0xff] %vm590_vm1, %v3376_v55  ;;  %3395 = vrcp.f32 %v553_v54  ;;  %2822 = vmatmul.mubr.msk.f32.vlgmr.msra.gmra.mrb[16].mxu1 %vm590_vm1, %v3726_v56 }
 0x110   : > { %v3380_v58 = vpop.eup %3379  ;;  %v552_v59 = vadd.f32 1.0, %v3378_v57  ;;  %1423 = vmatprep.mubr.f32.mxu1 %v4486_v48  ;;  %3297 = vmatpush3.bf16.msra.mxu1 %v3294_v33 }
 0x111   : > { %v3382_v60 = vpop.eup %3381  ;;  %v555_v61 = vadd.f32 1.0, %v3380_v58  ;;  %v3747_v10 = vld [vmem:[#allocation2 + $0x18] sm:$0xff]  ;;  %3299 = vmatprep.subr.bf16.mxu1 %v3298_v36 }
 0x112   : > { %v3384_v62 = vpop.eup %3383  ;;  %598 = vst.msk [vmem:[#allocation2 + $0x38] sm:$0xff] %vm590_vm1, %v3382_v60  ;;  %3397 = vrcp.f32 %v552_v59  ;;  %v3738_v2 = vld [vmem:[#allocation2 + $0x10] sm:$0xff] }
 0x113   : > { %3399 = vrcp.f32 %v555_v61  ;;  %v554_v0 = vadd.f32 1.0, %v3384_v62  ;;  %2823 = vmatmul.mubr.msk.f32.gmra.mrb[18].mxu1 %vm590_vm1, %v3733_v63 }
 0x114   : > { %v3386_v1 = vpop.eup %3385  ;;  %1429 = vmatprep.mubr.f32.mxu1 %v4486_v48  ;;  %3301 = vmatpush3.bf16.msra.mxu1 %v3298_v36 }
 0x115   : > { %v3388_v3 = vpop.eup %3387  ;;  %597 = vst.msk [vmem:[#allocation2 + $0x30] sm:$0xff] %vm590_vm1, %v3386_v1  ;;  %3401 = vrcp.f32 %v554_v0  ;;  %v3760_v15 = vld [vmem:[#allocation2 + $0x28] sm:$0xff] }
 0x116   : > { %v3390_v4 = vpop.eup %3389  ;;  %600 = vst.msk [vmem:[#allocation2 + $0x48] sm:$0xff] %vm590_vm1, %v3388_v3  ;;  %v3752_v12 = vld [vmem:[#allocation2 + $0x20] sm:$0xff] }
 0x117   : > { %v3392_v5 = vpop.eup %3391  ;;  %v557_v6 = vadd.f32 1.0, %v3390_v4  ;;  %2824 = vmatmul.mubr.msk.f32.gmra.mrb[20].mxu1 %vm590_vm1, %v3738_v2 }
 0x118   : > { %v3394_v7 = vpop.eup %3393  ;;  %v556_v8 = vadd.f32 1.0, %v3392_v5  ;;  %1435 = vmatprep.mubr.f32.mxu1 %v4486_v48 }
 0x119   : > { %v3396_v9 = vpop.eup %3395  ;;  %599 = vst.msk [vmem:[#allocation2 + $0x40] sm:$0xff] %vm590_vm1, %v3394_v7  ;;  %3403 = vrcp.f32 %v557_v6  ;;  %v3772_v19 = vld [vmem:[#allocation2 + $0x38] sm:$0xff] }
 0x11a   : > { %602 = vst.msk [vmem:[#allocation2 + $0x58] sm:$0xff] %vm590_vm1, %v3396_v9  ;;  %3405 = vrcp.f32 %v556_v8 }
 0x11b   : > { %2825 = vmatmul.mubr.msk.f32.gmra.mrb[22].mxu1 %vm590_vm1, %v3747_v10 }
 0x11c   : > { %v3398_v11 = vpop.eup %3397  ;;  %1441 = vmatprep.mubr.f32.mxu1 %v4486_v48  ;;  %v3766_v18 = vld [vmem:[#allocation2 + $0x30] sm:$0xff] }
 0x11d   : > { %v3400_v13 = vpop.eup %3399  ;;  %601 = vst.msk [vmem:[#allocation2 + $0x50] sm:$0xff] %vm590_vm1, %v3398_v11  ;;  %v3782_v21 = vld [vmem:[#allocation2 + $0x48] sm:$0xff] }
 0x11e   : > { %604 = vst.msk [vmem:[#allocation2 + $0x68] sm:$0xff] %vm590_vm1, %v3400_v13 }
 0x11f   : > { %v3402_v14 = vpop.eup %3401  ;;  %2826 = vmatmul.mubr.msk.f32.gmra.mrb[24].mxu1 %vm590_vm1, %v3752_v12 }
 0x120   : > { %603 = vst.msk [vmem:[#allocation2 + $0x60] sm:$0xff] %vm590_vm1, %v3402_v14  ;;  %1447 = vmatprep.mubr.f32.mxu1 %v4486_v48  ;;  %v3777_v20 = vld [vmem:[#allocation2 + $0x40] sm:$0xff] }
 0x121   : > { %v3792_v23 = vld [vmem:[#allocation2 + $0x58] sm:$0xff] }
 0x123   : > { %v3404_v16 = vpop.eup %3403  ;;  %2827 = vmatmul.mubr.msk.f32.gmra.mrb[26].mxu1 %vm590_vm1, %v3760_v15 }
 0x124   : > { %v3406_v17 = vpop.eup %3405  ;;  %606 = vst.msk [vmem:[#allocation2 + $0x78] sm:$0xff] %vm590_vm1, %v3404_v16  ;;  %1453 = vmatprep.mubr.f32.mxu1 %v4486_v48  ;;  %v3787_v22 = vld [vmem:[#allocation2 + $0x50] sm:$0xff] }
 0x125   : > { %605 = vst.msk [vmem:[#allocation2 + $0x70] sm:$0xff] %vm590_vm1, %v3406_v17  ;;  %v3802_v25 = vld [vmem:[#allocation2 + $0x68] sm:$0xff] }
 0x127   : > { %2828 = vmatmul.mubr.msk.f32.gmra.mrb[28].mxu1 %vm590_vm1, %v3766_v18  ;;  %v3797_v24 = vld [vmem:[#allocation2 + $0x60] sm:$0xff] }
 0x128   : > { %1459 = vmatprep.mubr.f32.mxu1 %v4486_v48 }
 0x12b   : > { %2829 = vmatmul.mubr.msk.f32.gmra.mrb[30].mxu1 %vm590_vm1, %v3772_v19  ;;  %v3812_v27 = vld [vmem:[#allocation2 + $0x78] sm:$0xff] }
 0x12c   : > { %1465 = vmatprep.mubr.f32.mxu1 %v4486_v48  ;;  %v3807_v26 = vld [vmem:[#allocation2 + $0x70] sm:$0xff] }
 0x12f   : > { %2830 = vmatmul.mubr.msk.f32.gmra.mrb[32].mxu1 %vm590_vm1, %v3777_v20 }
 0x130   : > { %1471 = vmatprep.mubr.f32.mxu1 %v4486_v48 }
 0x133   : > { %2831 = vmatmul.mubr.msk.f32.gmra.mrb[34].mxu1 %vm590_vm1, %v3782_v21 }
 0x134   : > { %1477 = vmatprep.mubr.f32.mxu1 %v4486_v48 }
 0x137   : > { %2832 = vmatmul.mubr.msk.f32.gmra.mrb[36].mxu1 %vm590_vm1, %v3787_v22 }
 0x138   : > { %1483 = vmatprep.mubr.f32.mxu1 %v4486_v48 }
 0x13b   : > { %2833 = vmatmul.mubr.msk.f32.gmra.mrb[38].mxu1 %vm590_vm1, %v3792_v23 }
 0x13c   : > { %1489 = vmatprep.mubr.f32.mxu1 %v4486_v48 }
 0x13f   : > { %2834 = vmatmul.mubr.msk.f32.gmra.mrb[40].mxu1 %vm590_vm1, %v3797_v24 }
 0x140   : > { %1495 = vmatprep.mubr.f32.mxu1 %v4486_v48 }
 0x143   : > { %2835 = vmatmul.mubr.msk.f32.gmra.mrb[42].mxu1 %vm590_vm1, %v3802_v25 }
 0x144   : > { %1501 = vmatprep.mubr.f32.mxu1 %v4486_v48 }
 0x147   : > { %2836 = vmatmul.mubr.msk.f32.gmra.mrb[44].mxu1 %vm590_vm1, %v3807_v26 }
 0x148   : > { %1507 = vmatprep.mubr.f32.mxu1 %v4486_v48 }
 0x14b   : > { %2837 = vmatmul.mubr.msk.f32.gmra.mrb[46].mxu1 %vm590_vm1, %v3812_v27 }
 0x1bf   : > { %v3100_v39 = vpop.f32.mrb[0].mxu1 }
 0x1c0   : > { %v2775_v40 = vmul.f32 -4.0, %v3100_v39  ;;  %v725_v41 = vpop.f32.mrb[1].mxu1 }
 0x1c1   : > { %v2774_v43 = vmul.f32 -4.0, %v725_v41  ;;  %3130 = vmatprep.mubr.msk.f32.mxu0 %vm590_vm1, %v725_v41 }
 0x1c2   : > { %v838_v46 = vmul.f32 1.442695, %v2775_v40  ;;  %3131 = vmatmul.mubr.msk.f32.vlgmr.msra.gmra.mrb[16].mxu0 %vm590_vm1, %v3100_v39 }
 0x1c3   : > { %v836_v47 = vmul.f32 1.442695, %v2774_v43  ;;  %v3103_v49 = vpop.f32.mrb[2].mxu1  ;;  %3281 = vmatpush3.bf16.msra.mxu0 %v3278_v30 }
 0x1c4   : > { %3407 = vpow2.f32 %v838_v46  ;;  %v2777_v50 = vmul.f32 -4.0, %v3103_v49  ;;  %v735_v51 = vpop.f32.mrb[3].mxu1  ;;  %3283 = vmatprep.subr.bf16.mxu0 %v3282_v42 }
 0x1c5   : > { %3409 = vpow2.f32 %v836_v47  ;;  %v2776_v53 = vmul.f32 -4.0, %v735_v51  ;;  %3133 = vmatprep.mubr.msk.f32.mxu0 %vm590_vm1, %v735_v51 }
 0x1c6   : > { %v842_v54 = vmul.f32 1.442695, %v2777_v50  ;;  %3134 = vmatmul.mubr.msk.f32.gmra.mrb[18].mxu0 %vm590_vm1, %v3103_v49 }
 0x1c7   : > { %v840_v55 = vmul.f32 1.442695, %v2776_v53  ;;  %v3106_v57 = vpop.f32.mrb[4].mxu1  ;;  %3285 = vmatpush3.bf16.msra.mxu0 %v3282_v42 }
 0x1c8   : > { %3411 = vpow2.f32 %v842_v54  ;;  %v2779_v58 = vmul.f32 -4.0, %v3106_v57  ;;  %v745_v59 = vpop.f32.mrb[5].mxu1  ;;  %3287 = vmatprep.subr.bf16.mxu0 %v3286_v52 }
 0x1c9   : > { %3413 = vpow2.f32 %v840_v55  ;;  %v2778_v60 = vmul.f32 -4.0, %v745_v59  ;;  %3136 = vmatprep.mubr.msk.f32.mxu0 %vm590_vm1, %v745_v59  ;;  %v2854_v59 = vld [vmem:[%s4484_s4 + $0x60] sm:$0xff] }
 0x1ca   : > { %v846_v61 = vmul.f32 1.442695, %v2779_v58  ;;  %3137 = vmatmul.mubr.msk.f32.gmra.mrb[20].mxu0 %vm590_vm1, %v3106_v57 }
 0x1cb   : > { %v844_v62 = vmul.f32 1.442695, %v2778_v60  ;;  %v3109_v0 = vpop.f32.mrb[6].mxu1  ;;  %v2857_v60 = vld [vmem:[%s4484_s4 + $0x78] sm:$0xff] }
 0x1cc   : > { %3415 = vpow2.f32 %v846_v61  ;;  %v2781_v1 = vmul.f32 -4.0, %v3109_v0  ;;  %v755_v3 = vpop.f32.mrb[7].mxu1 }
 0x1cd   : > { %3417 = vpow2.f32 %v844_v62  ;;  %v2780_v4 = vmul.f32 -4.0, %v755_v3  ;;  %3139 = vmatprep.mubr.msk.f32.mxu0 %vm590_vm1, %v755_v3 }
 0x1ce   : > { %v3408_v5 = vpop.eup %3407  ;;  %v850_v6 = vmul.f32 1.442695, %v2781_v1  ;;  %3140 = vmatmul.mubr.msk.f32.gmra.mrb[22].mxu0 %vm590_vm1, %v3109_v0  ;;  %v2861_v0 = vld [vmem:[%s4484_s4 + $0x98] sm:$0xff]  ;;  %v2864_v1 = vld [vmem:[%s4484_s4 + $0xb0] sm:$0xff] }
 0x1cf   : > { %v3410_v7 = vpop.eup %3409  ;;  %v869_v8 = vadd.f32 1.0, %v3408_v5  ;;  %v848_v9 = vmul.f32 1.442695, %v2780_v4  ;;  %v3112_v11 = vpop.f32.mrb[8].mxu1 }
 0x1d0   : > { %v868_v13 = vadd.f32 1.0, %v3410_v7  ;;  %3419 = vpow2.f32 %v850_v6  ;;  %v2783_v14 = vmul.f32 -4.0, %v3112_v11  ;;  %v765_v16 = vpop.f32.mrb[9].mxu1 }
 0x1d1   : > { %3421 = vrcp.f32 %v869_v8  ;;  %v2782_v17 = vmul.f32 -4.0, %v765_v16  ;;  %3142 = vmatprep.mubr.msk.f32.mxu0 %vm590_vm1, %v765_v16  ;;  %v2863_v16 = vld [vmem:[%s4484_s4 + $0xa8] sm:$0xff] }
 0x1d2   : > { %v3412_v28 = vpop.eup %3411  ;;  %3423 = vrcp.f32 %v868_v13  ;;  %v854_v29 = vmul.f32 1.442695, %v2783_v14  ;;  %3143 = vmatmul.mubr.msk.f32.gmra.mrb[24].mxu0 %vm590_vm1, %v3112_v11  ;;  %v3290_v13 = vpack.c.bf16 %v2864_v1, %v2861_v0  ;;  %v2860_v14 = vld [vmem:[%s4484_s4 + $0x90] sm:$0xff] }
 0x1d3   : > { %v3414_v30 = vpop.eup %3413  ;;  %v871_v31 = vadd.f32 1.0, %v3412_v28  ;;  %3425 = vpow2.f32 %v848_v9  ;;  %v852_v32 = vmul.f32 1.442695, %v2782_v17  ;;  %v3115_v33 = vpop.f32.mrb[10].mxu1  ;;  %v3288_v9 = vpack.c.bf16 %v2857_v60, %v2854_v59 }
 0x1d4   : > { %v870_v34 = vadd.f32 1.0, %v3414_v30  ;;  %3427 = vpow2.f32 %v854_v29  ;;  %v2785_v35 = vmul.f32 -4.0, %v3115_v33  ;;  %v775_v36 = vpop.f32.mrb[11].mxu1 }
 0x1d5   : > { %3429 = vrcp.f32 %v871_v31  ;;  %v2784_v37 = vmul.f32 -4.0, %v775_v36  ;;  %3145 = vmatprep.mubr.msk.f32.mxu0 %vm590_vm1, %v775_v36 }
 0x1d6   : > { %v3416_v38 = vpop.eup %3415  ;;  %3431 = vrcp.f32 %v870_v34  ;;  %v858_v39 = vmul.f32 1.442695, %v2785_v35  ;;  %3146 = vmatmul.mubr.msk.f32.gmra.mrb[26].mxu0 %vm590_vm1, %v3115_v33  ;;  %v3292_v33 = vpack.c.bf16 %v2863_v16, %v2860_v14 }
 0x1d7   : > { %v3418_v40 = vpop.eup %3417  ;;  %v873_v41 = vadd.f32 1.0, %v3416_v38  ;;  %3433 = vpow2.f32 %v852_v32  ;;  %v856_v42 = vmul.f32 1.442695, %v2784_v37  ;;  %v3118_v43 = vpop.f32.mrb[12].mxu1 }
 0x1d8   : > { %v872_v44 = vadd.f32 1.0, %v3418_v40  ;;  %3435 = vpow2.f32 %v858_v39  ;;  %v2787_v45 = vmul.f32 -4.0, %v3118_v43  ;;  %v785_v46 = vpop.f32.mrb[13].mxu1 }
 0x1d9   : > { %3437 = vrcp.f32 %v873_v41  ;;  %v2786_v47 = vmul.f32 -4.0, %v785_v46  ;;  %3148 = vmatprep.mubr.msk.f32.mxu0 %vm590_vm1, %v785_v46 }
 0x1da   : > { %v3420_v49 = vpop.eup %3419  ;;  %3439 = vrcp.f32 %v872_v44  ;;  %v862_v50 = vmul.f32 1.442695, %v2787_v45  ;;  %3149 = vmatmul.mubr.msk.f32.gmra.mrb[28].mxu0 %vm590_vm1, %v3118_v43 }
 0x1db   : > { %v3422_v51 = vpop.eup %3421  ;;  %v875_v52 = vadd.f32 1.0, %v3420_v49  ;;  %3441 = vpow2.f32 %v856_v42  ;;  %v860_v53 = vmul.f32 1.442695, %v2786_v47  ;;  %v3121_v54 = vpop.f32.mrb[14].mxu1 }
 0x1dc   : > { %v3424_v55 = vpop.eup %3423  ;;  %918 = vst.msk [vmem:[#allocation2 + $0x88] sm:$0xff] %vm590_vm1, %v3422_v51  ;;  %3443 = vpow2.f32 %v862_v50  ;;  %v2789_v57 = vmul.f32 -4.0, %v3121_v54  ;;  %v795_v58 = vpop.f32.mrb[15].mxu1 }
 0x1dd   : > { %v3426_v61 = vpop.eup %3425  ;;  %917 = vst.msk [vmem:[#allocation2 + $0x80] sm:$0xff] %vm590_vm1, %v3424_v55  ;;  %3445 = vrcp.f32 %v875_v52  ;;  %v2788_v62 = vmul.f32 -4.0, %v795_v58  ;;  %3151 = vmatprep.mubr.msk.f32.mxu0 %vm590_vm1, %v795_v58 }
 0x1de   : > { %v3428_v3 = vpop.eup %3427  ;;  %v874_v4 = vadd.f32 1.0, %v3426_v61  ;;  %3447 = vpow2.f32 %v860_v53  ;;  %v866_v5 = vmul.f32 1.442695, %v2789_v57  ;;  %3152 = vmatmul.mubr.msk.f32.gmra.mrb[30].mxu0 %vm590_vm1, %v3121_v54 }
 0x1df   : > { %v3430_v6 = vpop.eup %3429  ;;  %v877_v7 = vadd.f32 1.0, %v3428_v3  ;;  %v864_v8 = vmul.f32 1.442695, %v2788_v62  ;;  %3162 = vmatprep.mubr.msk.f32.mxu0 %vm590_vm1, %v3726_v56 }
 0x1e0   : > { %v3432_v11 = vpop.eup %3431  ;;  %920 = vst.msk [vmem:[#allocation2 + $0x98] sm:$0xff] %vm590_vm1, %v3430_v6  ;;  %3449 = vrcp.f32 %v874_v4 }
 0x1e1   : > { %v3434_v17 = vpop.eup %3433  ;;  %919 = vst.msk [vmem:[#allocation2 + $0x90] sm:$0xff] %vm590_vm1, %v3432_v11  ;;  %3451 = vrcp.f32 %v877_v7 }
 0x1e2   : > { %v3436_v28 = vpop.eup %3435  ;;  %v876_v56 = vadd.f32 1.0, %v3434_v17  ;;  %3453 = vpow2.f32 %v866_v5  ;;  %v3886_v29 = vpop.f32.mrb[16].mxu1  ;;  %3163 = vmatmul.mubr.msk.f32.vlgmr.msra.gmra.mrb[32].mxu0 %vm590_vm1, %v3733_v63 }
 0x1e3   : > { %v3438_v30 = vpop.eup %3437  ;;  %v879_v31 = vadd.f32 1.0, %v3436_v28  ;;  %3455 = vpow2.f32 %v864_v8  ;;  %v3890_v32 = vpop.f32.mrb[17].mxu1  ;;  %3165 = vmatprep.mubr.msk.f32.mxu0 %vm590_vm1, %v3738_v2  ;;  %3289 = vmatpush1.bf16.msra.mxu0 %v3288_v9  ;;  %v3900_v63 = vld [vmem:[#allocation2 + $0x88] sm:$0xff] }
 0x1e4   : > { %v3440_v34 = vpop.eup %3439  ;;  %922 = vst.msk [vmem:[#allocation2 + $0xa8] sm:$0xff] %vm590_vm1, %v3438_v30  ;;  %3457 = vrcp.f32 %v876_v56  ;;  %v3895_v35 = vld [vmem:[#allocation2 + $0x80] sm:$0xff]  ;;  %3291 = vmatprep.subr.bf16.mxu0 %v3290_v13 }
 0x1e5   : > { %v3442_v36 = vpop.eup %3441  ;;  %921 = vst.msk [vmem:[#allocation2 + $0xa0] sm:$0xff] %vm590_vm1, %v3440_v34  ;;  %3459 = vrcp.f32 %v879_v31  ;;  %3194 = vmatprep.mubr.msk.f32.mxu1 %vm590_vm1, %v3895_v35 }
 0x1e6   : > { %v3444_v37 = vpop.eup %3443  ;;  %v878_v2 = vadd.f32 1.0, %v3442_v36  ;;  %v3902_v38 = vpop.f32.mrb[18].mxu1  ;;  %3166 = vmatmul.mubr.msk.f32.gmra.mrb[34].mxu0 %vm590_vm1, %v3747_v10  ;;  %3195 = vmatmul.mubr.msk.f32.vlgmr.msra.gmra.mrb[48].mxu1 %vm590_vm1, %v3900_v63 }
 0x1e7   : > { %v3446_v39 = vpop.eup %3445  ;;  %v881_v40 = vadd.f32 1.0, %v3444_v37  ;;  %v3908_v41 = vpop.f32.mrb[19].mxu1  ;;  %3168 = vmatprep.mubr.msk.f32.mxu0 %vm590_vm1, %v3752_v12  ;;  %v3912_v42 = vld [vmem:[#allocation2 + $0x98] sm:$0xff]  ;;  %3293 = vmatpush1.bf16.msra.mxu0 %v3292_v33 }
 0x1e8   : > { %v3448_v43 = vpop.eup %3447  ;;  %924 = vst.msk [vmem:[#allocation2 + $0xb8] sm:$0xff] %vm590_vm1, %v3446_v39  ;;  %3461 = vrcp.f32 %v878_v2  ;;  %v3915_v44 = vld [vmem:[#allocation2 + $0x90] sm:$0xff]  ;;  %v2899_v39 = vld [vmem:[%s4484_s4 + $0xc8] sm:$0xff] }
 0x1e9   : > { %3463 = vrcp.f32 %v881_v40  ;;  %v880_v10 = vadd.f32 1.0, %v3448_v43  ;;  %3197 = vmatprep.mubr.msk.f32.mxu1 %vm590_vm1, %v3915_v44  ;;  %v2902_v40 = vld [vmem:[%s4484_s4 + $0xe0] sm:$0xff]  ;;  %v2903_v43 = vld [vmem:[%s4484_s4 + $0xe8] sm:$0xff] }
 0x1ea   : > { %v3450_v45 = vpop.eup %3449  ;;  %v3919_v46 = vpop.f32.mrb[20].mxu1  ;;  %3169 = vmatmul.mubr.msk.f32.gmra.mrb[36].mxu0 %vm590_vm1, %v3760_v15  ;;  %3198 = vmatmul.mubr.msk.f32.gmra.mrb[50].mxu1 %vm590_vm1, %v3912_v42 }
 0x1eb   : > { %v3452_v12 = vpop.eup %3451  ;;  %923 = vst.msk [vmem:[#allocation2 + $0xb0] sm:$0xff] %vm590_vm1, %v3450_v45  ;;  %3465 = vrcp.f32 %v880_v10  ;;  %v3926_v47 = vpop.f32.mrb[21].mxu1  ;;  %3171 = vmatprep.mubr.msk.f32.mxu0 %vm590_vm1, %v3766_v18  ;;  %v3930_v49 = vld [vmem:[#allocation2 + $0xa8] sm:$0xff]  ;;  %v2898_v10 = vld [vmem:[%s4484_s4 + $0xc0] sm:$0xff] }
 0x1ec   : > { %v3454_v50 = vpop.eup %3453  ;;  %926 = vst.msk [vmem:[#allocation2 + $0xc8] sm:$0xff] %vm590_vm1, %v3452_v12  ;;  %v3933_v51 = vld [vmem:[#allocation2 + $0xa0] sm:$0xff]  ;;  %v2901_v12 = vld [vmem:[%s4484_s4 + $0xd8] sm:$0xff] }
 0x1ed   : > { %v3456_v15 = vpop.eup %3455  ;;  %v883_v52 = vadd.f32 1.0, %v3454_v50  ;;  %3200 = vmatprep.mubr.msk.f32.mxu1 %vm590_vm1, %v3933_v51  ;;  %v2905_v50 = vld [vmem:[%s4484_s4 + $0xf8] sm:$0xff] }
 0x1ee   : > { %v3458_v53 = vpop.eup %3457  ;;  %v882_v54 = vadd.f32 1.0, %v3456_v15  ;;  %v3937_v55 = vpop.f32.mrb[22].mxu1  ;;  %3172 = vmatmul.mubr.msk.f32.gmra.mrb[38].mxu0 %vm590_vm1, %v3772_v19  ;;  %3201 = vmatmul.mubr.msk.f32.gmra.mrb[52].mxu1 %vm590_vm1, %v3930_v49 }
 0x1ef   : > { %v3460_v18 = vpop.eup %3459  ;;  %925 = vst.msk [vmem:[#allocation2 + $0xc0] sm:$0xff] %vm590_vm1, %v3458_v53  ;;  %3467 = vrcp.f32 %v883_v52  ;;  %v3944_v57 = vpop.f32.mrb[23].mxu1  ;;  %3174 = vmatprep.mubr.msk.f32.mxu0 %vm590_vm1, %v3777_v20  ;;  %v3949_v58 = vld [vmem:[#allocation2 + $0xb8] sm:$0xff]  ;;  %v2904_v52 = vld [vmem:[%s4484_s4 + $0xf0] sm:$0xff]  ;;  %v2907_v53 = vld [vmem:[%s4484_s4 + $0x108] sm:$0xff] }
 0x1f0   : > { %928 = vst.msk [vmem:[#allocation2 + $0xd8] sm:$0xff] %vm590_vm1, %v3460_v18  ;;  %3469 = vrcp.f32 %v882_v54  ;;  %v2906_v54 = vld [vmem:[%s4484_s4 + $0x100] sm:$0xff]  ;;  %v3308_v18 = vpack.c.bf16 %v2907_v53, %v2904_v52 }
 0x1f2   : > { %v3462_v59 = vpop.eup %3461  ;;  %v3951_v60 = vld [vmem:[#allocation2 + $0xb0] sm:$0xff]  ;;  %v3953_v19 = vpop.f32.mrb[24].mxu1  ;;  %3175 = vmatmul.mubr.msk.f32.gmra.mrb[40].mxu0 %vm590_vm1, %v3782_v21 }
 0x1f3   : > { %v3464_v61 = vpop.eup %3463  ;;  %927 = vst.msk [vmem:[#allocation2 + $0xd0] sm:$0xff] %vm590_vm1, %v3462_v59  ;;  %3203 = vmatprep.mubr.msk.f32.mxu1 %vm590_vm1, %v3951_v60  ;;  %v3960_v20 = vpop.f32.mrb[25].mxu1  ;;  %3177 = vmatprep.mubr.msk.f32.mxu0 %vm590_vm1, %v3787_v22  ;;  %v3967_v0 = vld [vmem:[#allocation2 + $0xc8] sm:$0xff] }
 0x1f4   : > { %930 = vst.msk [vmem:[#allocation2 + $0xe8] sm:$0xff] %vm590_vm1, %v3464_v61  ;;  %3204 = vmatmul.mubr.msk.f32.gmra.mrb[54].mxu1 %vm590_vm1, %v3949_v58 }
 0x1f5   : > { %v3466_v62 = vpop.eup %3465 }
 0x1f6   : > { %929 = vst.msk [vmem:[#allocation2 + $0xe0] sm:$0xff] %vm590_vm1, %v3466_v62  ;;  %v3970_v21 = vld [vmem:[#allocation2 + $0xc0] sm:$0xff]  ;;  %v3972_v1 = vpop.f32.mrb[26].mxu1  ;;  %3178 = vmatmul.mubr.msk.f32.gmra.mrb[42].mxu0 %vm590_vm1, %v3792_v23 }
 0x1f7   : > { %3206 = vmatprep.mubr.msk.f32.mxu1 %vm590_vm1, %v3970_v21  ;;  %v3978_v22 = vpop.f32.mrb[27].mxu1  ;;  %3180 = vmatprep.mubr.msk.f32.mxu0 %vm590_vm1, %v3797_v24  ;;  %v1671_v4 = vld [vmem:[#allocation2 + $0xd8] sm:$0xff] }
 0x1f8   : > { %3207 = vmatmul.mubr.msk.f32.gmra.mrb[56].mxu1 %vm590_vm1, %v3967_v0 }
 0x1f9   : > { %v3468_v3 = vpop.eup %3467 }
 0x1fa   : > { %v3470_v5 = vpop.eup %3469  ;;  %932 = vst.msk [vmem:[#allocation2 + $0xf8] sm:$0xff] %vm590_vm1, %v3468_v3  ;;  %v1670_v6 = vld [vmem:[#allocation2 + $0xd0] sm:$0xff]  ;;  %v3985_v7 = vpop.f32.mrb[28].mxu1  ;;  %3181 = vmatmul.mubr.msk.f32.gmra.mrb[44].mxu0 %vm590_vm1, %v3802_v25 }
 0x1fb   : > { %931 = vst.msk [vmem:[#allocation2 + $0xf0] sm:$0xff] %vm590_vm1, %v3470_v5  ;;  %3209 = vmatprep.mubr.msk.f32.mxu1 %vm590_vm1, %v1670_v6  ;;  %v3991_v23 = vpop.f32.mrb[29].mxu1  ;;  %3183 = vmatprep.mubr.msk.f32.mxu0 %vm590_vm1, %v3807_v26  ;;  %v3996_v8 = vld [vmem:[#allocation2 + $0xe8] sm:$0xff] }
 0x1fc   : > { %3210 = vmatmul.mubr.msk.f32.gmra.mrb[58].mxu1 %vm590_vm1, %v1671_v4 }
 0x1fd   : > { %v1672_v24 = vld [vmem:[#allocation2 + $0xe0] sm:$0xff] }
 0x1fe   : > { %3212 = vmatprep.mubr.msk.f32.mxu1 %vm590_vm1, %v1672_v24  ;;  %v3999_v9 = vpop.f32.mrb[30].mxu1  ;;  %3184 = vmatmul.mubr.msk.f32.gmra.mrb[46].mxu0 %vm590_vm1, %v3812_v27 }
 0x1ff   : > { %v4003_v25 = vpop.f32.mrb[31].mxu1  ;;  %1801 = vmatprep.mubr.f32.mxu0 %v4486_v48 }
 0x200   : > { %3213 = vmatmul.mubr.msk.f32.gmra.mrb[60].mxu1 %vm590_vm1, %v3996_v8 }
 0x201   : > { %v4008_v26 = vld [vmem:[#allocation2 + $0xf8] sm:$0xff] }
 0x202   : > { %v4010_v11 = vld [vmem:[#allocation2 + $0xf0] sm:$0xff]  ;;  %v4012_v13 = vpop.f32.mrb[32].mxu1  ;;  %2866 = vmatmul.mubr.msk.f32.vlgmr.msra.gmra.mrb[48].mxu0 %vm590_vm1, %v3895_v35 }
 0x203   : > { %3215 = vmatprep.mubr.msk.f32.mxu1 %vm590_vm1, %v4010_v11  ;;  %v4018_v27 = vpop.f32.mrb[33].mxu1  ;;  %1807 = vmatprep.mubr.f32.mxu0 %v4486_v48 }
 0x204   : > { %3216 = vmatmul.mubr.msk.f32.gmra.mrb[62].mxu1 %vm590_vm1, %v4008_v26 }
 0x205   : > { %2233 = vmatprep.mubr.f32.mxu1 %v4486_v48 }
 0x206   : > { %v4024_v14 = vpop.f32.mrb[34].mxu1  ;;  %2867 = vmatmul.mubr.msk.f32.gmra.mrb[50].mxu0 %vm590_vm1, %v3900_v63 }
 0x207   : > { %v4028_v16 = vpop.f32.mrb[35].mxu1  ;;  %1813 = vmatprep.mubr.f32.mxu0 %v4486_v48 }
 0x20a   : > { %v4031_v17 = vpop.f32.mrb[36].mxu1  ;;  %2868 = vmatmul.mubr.msk.f32.gmra.mrb[52].mxu0 %vm590_vm1, %v3915_v44  ;;  %v3302_v44 = vpack.c.bf16 %v2902_v40, %v2899_v39 }
 0x20b   : > { %v4035_v28 = vpop.f32.mrb[37].mxu1  ;;  %1819 = vmatprep.mubr.f32.mxu0 %v4486_v48 }
 0x20c   : > { %3303 = vmatprep.subr.bf16.mxu1 %v3302_v44 }
 0x20e   : > { %v4038_v56 = vpop.f32.mrb[38].mxu1  ;;  %2869 = vmatmul.mubr.msk.f32.gmra.mrb[54].mxu0 %vm590_vm1, %v3912_v42  ;;  %v2900_v42 = vld [vmem:[%s4484_s4 + $0xd0] sm:$0xff] }
 0x20f   : > { %v4042_v30 = vpop.f32.mrb[39].mxu1  ;;  %1825 = vmatprep.mubr.f32.mxu0 %v4486_v48  ;;  %v3310_v45 = vpack.c.bf16 %v2903_v43, %v2900_v42 }
 0x211   : > { %3311 = vmatprep.subr.bf16.mxu0 %v3310_v45 }
 0x212   : > { %v4045_v31 = vpop.f32.mrb[40].mxu1  ;;  %2870 = vmatmul.mubr.msk.f32.gmra.mrb[56].mxu0 %vm590_vm1, %v3933_v51  ;;  %v2908_v51 = vld [vmem:[%s4484_s4 + $0x110] sm:$0xff] }
 0x213   : > { %v4049_v33 = vpop.f32.mrb[41].mxu1  ;;  %1831 = vmatprep.mubr.f32.mxu0 %v4486_v48  ;;  %3313 = vmatpush3.bf16.msra.mxu0 %v3310_v45  ;;  %v3306_v15 = vpack.c.bf16 %v2908_v51, %v2905_v50 }
 0x216   : > { %v4052_v34 = vpop.f32.mrb[42].mxu1  ;;  %2871 = vmatmul.mubr.msk.f32.gmra.mrb[58].mxu0 %vm590_vm1, %v3930_v49  ;;  %v3304_v49 = vpack.c.bf16 %v2901_v12, %v2898_v10 }
 0x217   : > { %v4056_v35 = vpop.f32.mrb[43].mxu1  ;;  %1837 = vmatprep.mubr.f32.mxu0 %v4486_v48 }
 0x218   : > { %3305 = vmatpush1.bf16.msra.mxu1 %v3304_v49 }
 0x219   : > { %3307 = vmatprep.subr.bf16.mxu1 %v3306_v15 }
 0x21a   : > { %v4059_v36 = vpop.f32.mrb[44].mxu1  ;;  %2872 = vmatmul.mubr.msk.f32.gmra.mrb[60].mxu0 %vm590_vm1, %v3951_v60 }
 0x21b   : > { %v4063_v63 = vpop.f32.mrb[45].mxu1  ;;  %1843 = vmatprep.mubr.f32.mxu0 %v4486_v48 }
 0x21c   : > { %3309 = vmatpush1.bf16.msra.mxu1 %v3308_v18 }
 0x21e   : > { %v4066_v37 = vpop.f32.mrb[46].mxu1  ;;  %2873 = vmatmul.mubr.msk.f32.gmra.mrb[62].mxu0 %vm590_vm1, %v3949_v58  ;;  %v2909_v58 = vld [vmem:[%s4484_s4 + $0x118] sm:$0xff] }
 0x21f   : > { %v4070_v2 = vpop.f32.mrb[47].mxu1  ;;  %1849 = vmatprep.mubr.f32.mxu0 %v4486_v48  ;;  %v3314_v59 = vpack.c.bf16 %v2909_v58, %v2906_v54 }
 0x221   : > { %3315 = vmatprep.subr.bf16.mxu0 %v3314_v59 }
 0x222   : > { %2874 = vmatmul.mubr.msk.f32.gmra.mrb[64].mxu0 %vm590_vm1, %v3970_v21 }
 0x223   : > { %1855 = vmatprep.mubr.f32.mxu0 %v4486_v48  ;;  %3317 = vmatpush3.bf16.msra.mxu0 %v3314_v59 }
 0x226   : > { %2875 = vmatmul.mubr.msk.f32.gmra.mrb[66].mxu0 %vm590_vm1, %v3967_v0 }
 0x227   : > { %1861 = vmatprep.mubr.f32.mxu0 %v4486_v48 }
 0x22a   : > { %2876 = vmatmul.mubr.msk.f32.gmra.mrb[68].mxu0 %vm590_vm1, %v1670_v6 }
 0x22b   : > { %1867 = vmatprep.mubr.f32.mxu0 %v4486_v48 }
 0x22e   : > { %2877 = vmatmul.mubr.msk.f32.gmra.mrb[70].mxu0 %vm590_vm1, %v1671_v4 }
 0x22f   : > { %1873 = vmatprep.mubr.f32.mxu0 %v4486_v48 }
 0x232   : > { %2878 = vmatmul.mubr.msk.f32.gmra.mrb[72].mxu0 %vm590_vm1, %v1672_v24 }
 0x233   : > { %1879 = vmatprep.mubr.f32.mxu0 %v4486_v48 }
 0x236   : > { %2879 = vmatmul.mubr.msk.f32.gmra.mrb[74].mxu0 %vm590_vm1, %v3996_v8 }
 0x237   : > { %1885 = vmatprep.mubr.f32.mxu0 %v4486_v48 }
 0x23a   : > { %2880 = vmatmul.mubr.msk.f32.gmra.mrb[76].mxu0 %vm590_vm1, %v4010_v11 }
 0x23b   : > { %1891 = vmatprep.mubr.f32.mxu0 %v4486_v48 }
 0x23e   : > { %2881 = vmatmul.mubr.msk.f32.gmra.mrb[78].mxu0 %vm590_vm1, %v4008_v26 }
 0x295   : > { %v3132_v60 = vpop.f32.mrb[16].mxu0 }
 0x296   : > { %v2807_v61 = vmul.f32 -4.0, %v3132_v60  ;;  %v1051_v62 = vpop.f32.mrb[17].mxu0 }
 0x297   : > { %v2806_v0 = vmul.f32 -4.0, %v1051_v62 }
 0x298   : > { %v1164_v21 = vmul.f32 1.442695, %v2807_v61 }
 0x299   : > { %v1162_v3 = vmul.f32 1.442695, %v2806_v0  ;;  %v3135_v4 = vpop.f32.mrb[18].mxu0 }
 0x29a   : > { %3471 = vpow2.f32 %v1164_v21  ;;  %v2809_v5 = vmul.f32 -4.0, %v3135_v4  ;;  %v1061_v6 = vpop.f32.mrb[19].mxu0 }
 0x29b   : > { %3473 = vpow2.f32 %v1162_v3  ;;  %v2808_v24 = vmul.f32 -4.0, %v1061_v6 }
 0x29c   : > { %v1168_v8 = vmul.f32 1.442695, %v2809_v5 }
 0x29d   : > { %v1166_v11 = vmul.f32 1.442695, %v2808_v24  ;;  %v3138_v39 = vpop.f32.mrb[20].mxu0 }
 0x29e   : > { %3475 = vpow2.f32 %v1168_v8  ;;  %v2811_v40 = vmul.f32 -4.0, %v3138_v39  ;;  %v1071_v42 = vpop.f32.mrb[21].mxu0 }
 0x29f   : > { %3477 = vpow2.f32 %v1166_v11  ;;  %v2810_v26 = vmul.f32 -4.0, %v1071_v42 }
 0x2a0   : > { %v1172_v43 = vmul.f32 1.442695, %v2811_v40 }
 0x2a1   : > { %v1170_v44 = vmul.f32 1.442695, %v2810_v26  ;;  %v3141_v10 = vpop.f32.mrb[22].mxu0 }
 0x2a2   : > { %3479 = vpow2.f32 %v1172_v43  ;;  %v2813_v45 = vmul.f32 -4.0, %v3141_v10  ;;  %v1081_v12 = vpop.f32.mrb[23].mxu0 }
 0x2a3   : > { %3481 = vpow2.f32 %v1170_v44  ;;  %v2812_v49 = vmul.f32 -4.0, %v1081_v12 }
 0x2a4   : > { %v3472_v50 = vpop.eup %3471  ;;  %v1176_v51 = vmul.f32 1.442695, %v2813_v45 }
 0x2a5   : > { %v3474_v15 = vpop.eup %3473  ;;  %v1195_v52 = vadd.f32 1.0, %v3472_v50  ;;  %v1174_v53 = vmul.f32 1.442695, %v2812_v49  ;;  %v3144_v54 = vpop.f32.mrb[24].mxu0 }
 0x2a6   : > { %v1194_v18 = vadd.f32 1.0, %v3474_v15  ;;  %3483 = vpow2.f32 %v1176_v51  ;;  %v2815_v58 = vmul.f32 -4.0, %v3144_v54  ;;  %v1091_v59 = vpop.f32.mrb[25].mxu0 }
 0x2a7   : > { %3485 = vrcp.f32 %v1195_v52  ;;  %v2814_v60 = vmul.f32 -4.0, %v1091_v59 }
 0x2a8   : > { %v3476_v61 = vpop.eup %3475  ;;  %3487 = vrcp.f32 %v1194_v18  ;;  %v1180_v62 = vmul.f32 1.442695, %v2815_v58 }
 0x2a9   : > { %v3478_v0 = vpop.eup %3477  ;;  %v1197_v21 = vadd.f32 1.0, %v3476_v61  ;;  %3489 = vpow2.f32 %v1174_v53  ;;  %v1178_v3 = vmul.f32 1.442695, %v2814_v60  ;;  %v3147_v4 = vpop.f32.mrb[26].mxu0 }
 0x2aa   : > { %v1196_v5 = vadd.f32 1.0, %v3478_v0  ;;  %3491 = vpow2.f32 %v1180_v62  ;;  %v2817_v6 = vmul.f32 -4.0, %v3147_v4  ;;  %v1101_v24 = vpop.f32.mrb[27].mxu0 }
 0x2ab   : > { %3493 = vrcp.f32 %v1197_v21  ;;  %v2816_v8 = vmul.f32 -4.0, %v1101_v24 }
 0x2ac   : > { %v3480_v11 = vpop.eup %3479  ;;  %3495 = vrcp.f32 %v1196_v5  ;;  %v1184_v39 = vmul.f32 1.442695, %v2817_v6 }
 0x2ad   : > { %v3482_v40 = vpop.eup %3481  ;;  %v1199_v42 = vadd.f32 1.0, %v3480_v11  ;;  %3497 = vpow2.f32 %v1178_v3  ;;  %v1182_v26 = vmul.f32 1.442695, %v2816_v8  ;;  %v3150_v43 = vpop.f32.mrb[28].mxu0 }
 0x2ae   : > { %v1198_v44 = vadd.f32 1.0, %v3482_v40  ;;  %3499 = vpow2.f32 %v1184_v39  ;;  %v2819_v10 = vmul.f32 -4.0, %v3150_v43  ;;  %v1111_v45 = vpop.f32.mrb[29].mxu0 }
 0x2af   : > { %3501 = vrcp.f32 %v1199_v42  ;;  %v2818_v12 = vmul.f32 -4.0, %v1111_v45 }
 0x2b0   : > { %v3484_v49 = vpop.eup %3483  ;;  %3503 = vrcp.f32 %v1198_v44  ;;  %v1188_v50 = vmul.f32 1.442695, %v2819_v10 }
 0x2b1   : > { %v3486_v51 = vpop.eup %3485  ;;  %v1201_v15 = vadd.f32 1.0, %v3484_v49  ;;  %3505 = vpow2.f32 %v1182_v26  ;;  %v1186_v52 = vmul.f32 1.442695, %v2818_v12  ;;  %v3153_v53 = vpop.f32.mrb[30].mxu0 }
 0x2b2   : > { %v3488_v54 = vpop.eup %3487  ;;  %1244 = vst.msk [vmem:[#allocation2 + $0x108] sm:$0xff] %vm590_vm1, %v3486_v51  ;;  %3507 = vpow2.f32 %v1188_v50  ;;  %v2821_v18 = vmul.f32 -4.0, %v3153_v53  ;;  %v1121_v58 = vpop.f32.mrb[31].mxu0 }
 0x2b3   : > { %v3490_v59 = vpop.eup %3489  ;;  %1243 = vst.msk [vmem:[#allocation2 + $0x100] sm:$0xff] %vm590_vm1, %v3488_v54  ;;  %3509 = vrcp.f32 %v1201_v15  ;;  %v2820_v60 = vmul.f32 -4.0, %v1121_v58 }
 0x2b4   : > { %v3492_v61 = vpop.eup %3491  ;;  %v1200_v62 = vadd.f32 1.0, %v3490_v59  ;;  %3511 = vpow2.f32 %v1186_v52  ;;  %v1192_v0 = vmul.f32 1.442695, %v2821_v18 }
 0x2b5   : > { %v3494_v21 = vpop.eup %3493  ;;  %v1203_v3 = vadd.f32 1.0, %v3492_v61  ;;  %v1190_v4 = vmul.f32 1.442695, %v2820_v60  ;;  %v3164_v5 = vpop.f32.mrb[32].mxu0 }
 0x2b6   : > { %v3496_v6 = vpop.eup %3495  ;;  %1246 = vst.msk [vmem:[#allocation2 + $0x118] sm:$0xff] %vm590_vm1, %v3494_v21  ;;  %3513 = vrcp.f32 %v1200_v62  ;;  %v1580_v24 = vpop.f32.mrb[33].mxu0 }
 0x2b7   : > { %v3498_v8 = vpop.eup %3497  ;;  %1245 = vst.msk [vmem:[#allocation2 + $0x110] sm:$0xff] %vm590_vm1, %v3496_v6  ;;  %3515 = vrcp.f32 %v1203_v3 }
 0x2b8   : > { %v3500_v11 = vpop.eup %3499  ;;  %v1202_v39 = vadd.f32 1.0, %v3498_v8  ;;  %3517 = vpow2.f32 %v1192_v0 }
 0x2b9   : > { %v3502_v40 = vpop.eup %3501  ;;  %v1205_v42 = vadd.f32 1.0, %v3500_v11  ;;  %3519 = vpow2.f32 %v1190_v4  ;;  %v3167_v26 = vpop.f32.mrb[34].mxu0  ;;  %v2093_v15 = vld [vmem:[#allocation2 + $0x108] sm:$0xff] }
 0x2ba   : > { %v3196_v43 = vpop.f32.mrb[48].mxu1  ;;  %v3504_v44 = vpop.eup %3503  ;;  %1248 = vst.msk [vmem:[#allocation2 + $0x128] sm:$0xff] %vm590_vm1, %v3502_v40  ;;  %3521 = vrcp.f32 %v1202_v39  ;;  %v2092_v49 = vld [vmem:[#allocation2 + $0x100] sm:$0xff] }
 0x2bb   : > { %v4134_v10 = vmul.f32 %v3196_v43, %v3164_v5  ;;  %v1590_v45 = vpop.f32.mrb[35].mxu0  ;;  %v1964_v12 = vpop.f32.mrb[49].mxu1  ;;  %1247 = vst.msk [vmem:[#allocation2 + $0x120] sm:$0xff] %vm590_vm1, %v3504_v44  ;;  %3523 = vrcp.f32 %v1205_v42  ;;  %2910 = vmatmul.mubr.msk.f32.vlgmr.msra.gmra.mrb[64].mxu1 %vm590_vm1, %v2092_v49  ;;  %3226 = vmatprep.mubr.msk.f32.mxu0 %vm590_vm1, %v2092_v49 }
 0x2bc   : > { %v3506_v50 = vpop.eup %3505  ;;  %v4137_v51 = vmul.f32 %v1964_v12, %v1580_v24  ;;  %3227 = vmatmul.mubr.msk.f32.vlgmr.msra.gmra.mrb[80].mxu0 %vm590_vm1, %v2093_v15  ;;  %2239 = vmatprep.mubr.f32.mxu1 %v4486_v48 }
 0x2bd   : > { %v3508_v52 = vpop.eup %3507  ;;  %v1204_v53 = vadd.f32 1.0, %v3506_v50  ;;  %v3170_v58 = vpop.f32.mrb[36].mxu0  ;;  %v2095_v5 = vld [vmem:[#allocation2 + $0x118] sm:$0xff] }
 0x2be   : > { %v3510_v54 = vpop.eup %3509  ;;  %v1207_v18 = vadd.f32 1.0, %v3508_v52  ;;  %v3199_v59 = vpop.f32.mrb[50].mxu1  ;;  %v2094_v21 = vld [vmem:[#allocation2 + $0x110] sm:$0xff] }
 0x2bf   : > { %v3512_v60 = vpop.eup %3511  ;;  %1250 = vst.msk [vmem:[#allocation2 + $0x138] sm:$0xff] %vm590_vm1, %v3510_v54  ;;  %3525 = vrcp.f32 %v1204_v53  ;;  %v4144_v61 = vmul.f32 %v3199_v59, %v3167_v26  ;;  %v1600_v62 = vpop.f32.mrb[37].mxu0  ;;  %2911 = vmatmul.mubr.msk.f32.gmra.mrb[66].mxu1 %vm590_vm1, %v2093_v15  ;;  %3229 = vmatprep.mubr.msk.f32.mxu0 %vm590_vm1, %v2094_v21 }
 0x2c0   : > { %v1974_v0 = vpop.f32.mrb[51].mxu1  ;;  %3527 = vrcp.f32 %v1207_v18  ;;  %v1206_v3 = vadd.f32 1.0, %v3512_v60  ;;  %v3514_v6 = vpop.eup %3513  ;;  %3230 = vmatmul.mubr.msk.f32.gmra.mrb[82].mxu0 %vm590_vm1, %v2095_v5  ;;  %2245 = vmatprep.mubr.f32.mxu1 %v4486_v48 }
 0x2c1   : > { %v4146_v4 = vmul.f32 %v1974_v0, %v1590_v45  ;;  %v3516_v24 = vpop.eup %3515  ;;  %1249 = vst.msk [vmem:[#allocation2 + $0x130] sm:$0xff] %vm590_vm1, %v3514_v6  ;;  %v3173_v8 = vpop.f32.mrb[38].mxu0  ;;  %v2097_v39 = vld [vmem:[#allocation2 + $0x128] sm:$0xff] }
 0x2c2   : > { %3529 = vrcp.f32 %v1206_v3  ;;  %v3202_v11 = vpop.f32.mrb[52].mxu1  ;;  %v3518_v40 = vpop.eup %3517  ;;  %1252 = vst.msk [vmem:[#allocation2 + $0x148] sm:$0xff] %vm590_vm1, %v3516_v24  ;;  %v2096_v44 = vld [vmem:[#allocation2 + $0x120] sm:$0xff] }
 0x2c3   : > { %v4154_v42 = vmul.f32 %v3202_v11, %v3170_v58  ;;  %v1610_v26 = vpop.f32.mrb[39].mxu0  ;;  %v1984_v43 = vpop.f32.mrb[53].mxu1  ;;  %v1209_v12 = vadd.f32 1.0, %v3518_v40  ;;  %2912 = vmatmul.mubr.msk.f32.gmra.mrb[68].mxu1 %vm590_vm1, %v2094_v21  ;;  %3232 = vmatprep.mubr.msk.f32.mxu0 %vm590_vm1, %v2096_v44 }
 0x2c4   : > { %v3520_v45 = vpop.eup %3519  ;;  %v4156_v49 = vmul.f32 %v1984_v43, %v1600_v62  ;;  %3233 = vmatmul.mubr.msk.f32.gmra.mrb[84].mxu0 %vm590_vm1, %v2097_v39  ;;  %2251 = vmatprep.mubr.f32.mxu1 %v4486_v48 }
 0x2c5   : > { %v3522_v50 = vpop.eup %3521  ;;  %v1208_v15 = vadd.f32 1.0, %v3520_v45  ;;  %3531 = vrcp.f32 %v1209_v12  ;;  %v3176_v53 = vpop.f32.mrb[40].mxu0 }
 0x2c6   : > { %v3524_v52 = vpop.eup %3523  ;;  %1251 = vst.msk [vmem:[#allocation2 + $0x140] sm:$0xff] %vm590_vm1, %v3522_v50  ;;  %v1620_v54 = vpop.f32.mrb[41].mxu0  ;;  %v2099_v58 = vld [vmem:[#allocation2 + $0x138] sm:$0xff] }
 0x2c7   : > { %1254 = vst.msk [vmem:[#allocation2 + $0x158] sm:$0xff] %vm590_vm1, %v3524_v52  ;;  %3533 = vrcp.f32 %v1208_v15  ;;  %v3205_v18 = vpop.f32.mrb[54].mxu1  ;;  %2913 = vmatmul.mubr.msk.f32.gmra.mrb[70].mxu1 %vm590_vm1, %v2095_v5 }
 0x2c8   : > { %v4165_v60 = vmul.f32 %v3205_v18, %v3173_v8  ;;  %v1994_v62 = vpop.f32.mrb[55].mxu1  ;;  %v2098_v0 = vld [vmem:[#allocation2 + $0x130] sm:$0xff]  ;;  %2257 = vmatprep.mubr.f32.mxu1 %v4486_v48 }
 0x2c9   : > { %v3526_v59 = vpop.eup %3525  ;;  %v4169_v3 = vmul.f32 %v1994_v62, %v1610_v26  ;;  %3235 = vmatprep.mubr.msk.f32.mxu0 %vm590_vm1, %v2098_v0  ;;  %v3179_v6 = vpop.f32.mrb[42].mxu0  ;;  %v2101_v11 = vld [vmem:[#allocation2 + $0x148] sm:$0xff] }
 0x2ca   : > { %v3528_v21 = vpop.eup %3527  ;;  %1253 = vst.msk [vmem:[#allocation2 + $0x150] sm:$0xff] %vm590_vm1, %v3526_v59  ;;  %3236 = vmatmul.mubr.msk.f32.gmra.mrb[86].mxu0 %vm590_vm1, %v2099_v58  ;;  %v1630_v5 = vpop.f32.mrb[43].mxu0 }
 0x2cb   : > { %1256 = vst.msk [vmem:[#allocation2 + $0x168] sm:$0xff] %vm590_vm1, %v3528_v21  ;;  %v3208_v8 = vpop.f32.mrb[56].mxu1  ;;  %2914 = vmatmul.mubr.msk.f32.gmra.mrb[72].mxu1 %vm590_vm1, %v2096_v44 }
 0x2cc   : > { %v3530_v24 = vpop.eup %3529  ;;  %v4176_v40 = vmul.f32 %v3208_v8, %v3176_v53  ;;  %v2004_v43 = vpop.f32.mrb[57].mxu1  ;;  %2263 = vmatprep.mubr.f32.mxu1 %v4486_v48 }
 0x2cd   : > { %1255 = vst.msk [vmem:[#allocation2 + $0x160] sm:$0xff] %vm590_vm1, %v3530_v24  ;;  %v2100_v26 = vld [vmem:[#allocation2 + $0x140] sm:$0xff]  ;;  %v4179_v45 = vmul.f32 %v2004_v43, %v1620_v54  ;;  %v3182_v12 = vpop.f32.mrb[44].mxu0 }
 0x2ce   : > { %3238 = vmatprep.mubr.msk.f32.mxu0 %vm590_vm1, %v2100_v26  ;;  %v1640_v50 = vpop.f32.mrb[45].mxu0  ;;  %v2103_v44 = vld [vmem:[#allocation2 + $0x158] sm:$0xff] }
 0x2cf   : > { %3239 = vmatmul.mubr.msk.f32.gmra.mrb[88].mxu0 %vm590_vm1, %v2101_v11  ;;  %v3532_v15 = vpop.eup %3531  ;;  %v3211_v52 = vpop.f32.mrb[58].mxu1  ;;  %2915 = vmatmul.mubr.msk.f32.gmra.mrb[74].mxu1 %vm590_vm1, %v2097_v39 }
 0x2d0   : > { %1258 = vst.msk [vmem:[#allocation2 + $0x178] sm:$0xff] %vm590_vm1, %v3532_v15  ;;  %v4185_v53 = vmul.f32 %v3211_v52, %v3179_v6  ;;  %v2014_v59 = vpop.f32.mrb[59].mxu1  ;;  %2269 = vmatprep.mubr.f32.mxu1 %v4486_v48 }
 0x2d1   : > { %v3534_v18 = vpop.eup %3533  ;;  %v2102_v62 = vld [vmem:[#allocation2 + $0x150] sm:$0xff]  ;;  %v4189_v54 = vmul.f32 %v2014_v59, %v1630_v5  ;;  %v3185_v21 = vpop.f32.mrb[46].mxu0 }
 0x2d2   : > { %1257 = vst.msk [vmem:[#allocation2 + $0x170] sm:$0xff] %vm590_vm1, %v3534_v18  ;;  %3241 = vmatprep.mubr.msk.f32.mxu0 %vm590_vm1, %v2102_v62  ;;  %v1650_v39 = vpop.f32.mrb[47].mxu0  ;;  %v2105_v6 = vld [vmem:[#allocation2 + $0x168] sm:$0xff] }
 0x2d3   : > { %4488 = vst [vmem:[#allocation3_spill] sm:$0xff] %v4189_v54  ;;  %3242 = vmatmul.mubr.msk.f32.gmra.mrb[90].mxu0 %vm590_vm1, %v2103_v44  ;;  %v3214_v24 = vpop.f32.mrb[60].mxu1  ;;  %2916 = vmatmul.mubr.msk.f32.gmra.mrb[76].mxu1 %vm590_vm1, %v2098_v0 }
 0x2d4   : > { %v2104_v8 = vld [vmem:[#allocation2 + $0x160] sm:$0xff]  ;;  %v4194_v43 = vmul.f32 %v3214_v24, %v3182_v12  ;;  %v2024_v15 = vpop.f32.mrb[61].mxu1  ;;  %2275 = vmatprep.mubr.f32.mxu1 %v4486_v48 }
 0x2d5   : > { %3244 = vmatprep.mubr.msk.f32.mxu0 %vm590_vm1, %v2104_v8  ;;  %v4198_v5 = vmul.f32 %v2024_v15, %v1640_v50  ;;  %v1803_v52 = vpop.f32.mrb[48].mxu0  ;;  %v4490_v50 = vmov 0.0  }
 0x2d6   : > { %4489 = vst [vmem:[#allocation4_spill] sm:$0xff] %v4194_v43  ;;  %v4202_v18 = vmul.f32 %v1803_v52, %v3886_v29  ;;  %v1805_v59 = vpop.f32.mrb[49].mxu0  ;;  %1260 = vst.msk [vmem:[%s4325_s16] sm:$0xff] %vm1259_vm2, %v4490_v50 }
 0x2d7   : > { %3245 = vmatmul.mubr.msk.f32.gmra.mrb[92].mxu0 %vm590_vm1, %v2105_v6  ;;  %v3217_v54 = vpop.f32.mrb[62].mxu1  ;;  %v4205_v0 = vmul.f32 %v1805_v59, %v3890_v32  ;;  %2917 = vmatmul.mubr.msk.f32.gmra.mrb[78].mxu1 %vm590_vm1, %v2099_v58  ;;  %v2107_v12 = vld [vmem:[#allocation2 + $0x178] sm:$0xff]  ;;  %1261 = vst.msk [vmem:[%s4325_s16 + $0x8] sm:$0xff] %vm1259_vm2, %v4490_v50  ;;  %1262 = vst.msk [vmem:[%s4325_s16 + $0x10] sm:$0xff] %vm1259_vm2, %v4490_v50 }
 0x2d8   : > { %v4208_v24 = vmul.f32 %v3217_v54, %v3185_v21  ;;  %v2034_v43 = vpop.f32.mrb[63].mxu1  ;;  %2281 = vmatprep.mubr.f32.mxu1 %v4490_v50  ;;  %1263 = vst.msk [vmem:[%s4325_s16 + $0x18] sm:$0xff] %vm1259_vm2, %v4490_v50  ;;  %1264 = vst.msk [vmem:[%s4325_s16 + $0x20] sm:$0xff] %vm1259_vm2, %v4490_v50 }
 0x2d9   : > { %v2106_v48 = vld [vmem:[#allocation2 + $0x170] sm:$0xff]  ;;  %v4211_v15 = vmul.f32 %v2034_v43, %v1650_v39  ;;  %v1809_v29 = vpop.f32.mrb[50].mxu0  ;;  %1265 = vst.msk [vmem:[%s4325_s16 + $0x28] sm:$0xff] %vm1259_vm2, %v4490_v50  ;;  %1266 = vst.msk [vmem:[%s4325_s16 + $0x30] sm:$0xff] %vm1259_vm2, %v4490_v50 }
 0x2da   : > { %3247 = vmatprep.mubr.msk.f32.mxu0 %vm590_vm1, %v2106_v48  ;;  %v4216_v52 = vmul.f32 %v1809_v29, %v3902_v38  ;;  %v1811_v32 = vpop.f32.mrb[51].mxu0  ;;  %1267 = vst.msk [vmem:[%s4325_s16 + $0x38] sm:$0xff] %vm1259_vm2, %v4490_v50  ;;  %1268 = vst.msk [vmem:[%s4325_s16 + $0x40] sm:$0xff] %vm1259_vm2, %v4490_v50 }
 0x2db   : > { %3248 = vmatmul.mubr.msk.f32.gmra.mrb[94].mxu0 %vm590_vm1, %v2107_v12  ;;  %v4219_v58 = vmul.f32 %v1811_v32, %v3908_v41  ;;  %2918 = vmatmul.mubr.msk.f32.gmra.mrb[80].mxu1 %vm590_vm1, %v2100_v26  ;;  %1269 = vst.msk [vmem:[%s4325_s16 + $0x48] sm:$0xff] %vm1259_vm2, %v4490_v50  ;;  %1270 = vst.msk [vmem:[%s4325_s16 + $0x50] sm:$0xff] %vm1259_vm2, %v4490_v50 }
 0x2dc   : > { %2287 = vmatprep.mubr.f32.mxu1 %v4490_v50  ;;  %1271 = vst.msk [vmem:[%s4325_s16 + $0x58] sm:$0xff] %vm1259_vm2, %v4490_v50  ;;  %1272 = vst.msk [vmem:[%s4325_s16 + $0x60] sm:$0xff] %vm1259_vm2, %v4490_v50 }
 0x2dd   : > { %v1815_v54 = vpop.f32.mrb[52].mxu0  ;;  %1273 = vst.msk [vmem:[%s4325_s16 + $0x68] sm:$0xff] %vm1259_vm2, %v4490_v50  ;;  %1274 = vst.msk [vmem:[%s4325_s16 + $0x70] sm:$0xff] %vm1259_vm2, %v4490_v50 }
 0x2de   : > { %v4224_v21 = vmul.f32 %v1815_v54, %v3919_v46  ;;  %v1817_v39 = vpop.f32.mrb[53].mxu0  ;;  %1275 = vst.msk [vmem:[%s4325_s16 + $0x78] sm:$0xff] %vm1259_vm2, %v4490_v50 }
 0x2df   : > { %v4227_v43 = vmul.f32 %v1817_v39, %v3926_v47  ;;  %2919 = vmatmul.mubr.msk.f32.gmra.mrb[82].mxu1 %vm590_vm1, %v2101_v11 }
 0x2e0   : > { %2293 = vmatprep.mubr.f32.mxu1 %v4490_v50 }
 0x2e1   : > { %v1821_v38 = vpop.f32.mrb[54].mxu0 }
 0x2e2   : > { %v4232_v41 = vmul.f32 %v1821_v38, %v3937_v55  ;;  %v1823_v59 = vpop.f32.mrb[55].mxu0 }
 0x2e3   : > { %v4235_v26 = vmul.f32 %v1823_v59, %v3944_v57  ;;  %2920 = vmatmul.mubr.msk.f32.gmra.mrb[84].mxu1 %vm590_vm1, %v2102_v62 }
 0x2e4   : > { %2299 = vmatprep.mubr.f32.mxu1 %v4490_v50 }
 0x2e5   : > { %v1827_v46 = vpop.f32.mrb[56].mxu0 }
 0x2e6   : > { %v4240_v47 = vmul.f32 %v1827_v46, %v3953_v19  ;;  %v1829_v29 = vpop.f32.mrb[57].mxu0 }
 0x2e7   : > { %v4243_v11 = vmul.f32 %v1829_v29, %v3960_v20  ;;  %2921 = vmatmul.mubr.msk.f32.gmra.mrb[86].mxu1 %vm590_vm1, %v2103_v44 }
 0x2e8   : > { %2305 = vmatprep.mubr.f32.mxu1 %v4490_v50 }
 0x2e9   : > { %v1833_v55 = vpop.f32.mrb[58].mxu0 }
 0x2ea   : > { %v4248_v57 = vmul.f32 %v1833_v55, %v3972_v1  ;;  %v1835_v32 = vpop.f32.mrb[59].mxu0 }
 0x2eb   : > { %v4251_v62 = vmul.f32 %v1835_v32, %v3978_v22  ;;  %2922 = vmatmul.mubr.msk.f32.gmra.mrb[88].mxu1 %vm590_vm1, %v2104_v8 }
 0x2ec   : > { %2311 = vmatprep.mubr.f32.mxu1 %v4490_v50 }
 0x2ed   : > { %v1839_v19 = vpop.f32.mrb[60].mxu0 }
 0x2ee   : > { %v4256_v20 = vmul.f32 %v1839_v19, %v3985_v7  ;;  %v1841_v54 = vpop.f32.mrb[61].mxu0 }
 0x2ef   : > { %v4259_v44 = vmul.f32 %v1841_v54, %v3991_v23  ;;  %2923 = vmatmul.mubr.msk.f32.gmra.mrb[90].mxu1 %vm590_vm1, %v2105_v6 }
 0x2f0   : > { %2317 = vmatprep.mubr.f32.mxu1 %v4490_v50 }
 0x2f1   : > { %v1845_v1 = vpop.f32.mrb[62].mxu0 }
 0x2f2   : > { %v4264_v22 = vmul.f32 %v1845_v1, %v3999_v9  ;;  %v1847_v39 = vpop.f32.mrb[63].mxu0 }
 0x2f3   : > { %v4267_v8 = vmul.f32 %v1847_v39, %v4003_v25  ;;  %2924 = vmatmul.mubr.msk.f32.gmra.mrb[92].mxu1 %vm590_vm1, %v2106_v48 }
 0x2f4   : > { %2323 = vmatprep.mubr.f32.mxu1 %v4490_v50 }
 0x2f5   : > { %v1851_v7 = vpop.f32.mrb[64].mxu0 }
 0x2f6   : > { %v4272_v23 = vmul.f32 %v1851_v7, %v4012_v13  ;;  %v1853_v38 = vpop.f32.mrb[65].mxu0 }
 0x2f7   : > { %v4275_v6 = vmul.f32 %v1853_v38, %v4018_v27  ;;  %2925 = vmatmul.mubr.msk.f32.gmra.mrb[94].mxu1 %vm590_vm1, %v2107_v12 }
 0x2f9   : > { %v1857_v9 = vpop.f32.mrb[66].mxu0 }
 0x2fa   : > { %v4279_v59 = vmul.f32 %v1857_v9, %v4024_v14  ;;  %v1859_v25 = vpop.f32.mrb[67].mxu0 }
 0x2fb   : > { %v4282_v46 = vmul.f32 %v1859_v25, %v4028_v16 }
 0x2fd   : > { %v1863_v48 = vpop.f32.mrb[68].mxu0 }
 0x2fe   : > { %v4285_v29 = vmul.f32 %v1863_v48, %v4031_v17  ;;  %v1865_v13 = vpop.f32.mrb[69].mxu0 }
 0x2ff   : > { %v4288_v55 = vmul.f32 %v1865_v13, %v4035_v28 }
 0x301   : > { %v1869_v27 = vpop.f32.mrb[70].mxu0 }
 0x302   : > { %v4291_v32 = vmul.f32 %v1869_v27, %v4038_v56  ;;  %v1871_v12 = vpop.f32.mrb[71].mxu0 }
 0x303   : > { %v4294_v14 = vmul.f32 %v1871_v12, %v4042_v30 }
 0x305   : > { %v1875_v19 = vpop.f32.mrb[72].mxu0 }
 0x306   : > { %v4297_v16 = vmul.f32 %v1875_v19, %v4045_v31  ;;  %v1877_v54 = vpop.f32.mrb[73].mxu0 }
 0x307   : > { %v4300_v17 = vmul.f32 %v1877_v54, %v4049_v33 }
 0x309   : > { %v1881_v1 = vpop.f32.mrb[74].mxu0 }
 0x30a   : > { %v4303_v28 = vmul.f32 %v1881_v1, %v4052_v34  ;;  %v1883_v39 = vpop.f32.mrb[75].mxu0 }
 0x30b   : > { %v4306_v56 = vmul.f32 %v1883_v39, %v4056_v35 }
 0x30d   : > { %v1887_v7 = vpop.f32.mrb[76].mxu0 }
 0x30e   : > { %v4309_v30 = vmul.f32 %v1887_v7, %v4059_v36  ;;  %v1889_v38 = vpop.f32.mrb[77].mxu0 }
 0x30f   : > { %v4312_v31 = vmul.f32 %v1889_v38, %v4063_v63 }
 0x311   : > { %v1893_v9 = vpop.f32.mrb[78].mxu0 }
 0x312   : > { %v4315_v33 = vmul.f32 %v1893_v9, %v4066_v37  ;;  %v1895_v25 = vpop.f32.mrb[79].mxu0 }
 0x313   : > { %v4318_v34 = vmul.f32 %v1895_v25, %v4070_v2 }
 0x38e   : > { %v2235_v35 = vpop.f32.mrb[64].mxu1 }
 0x38f   : > { %v2475_v36 = vmul.f32 %v2235_v35, %v4202_v18  ;;  %v2237_v63 = vpop.f32.mrb[65].mxu1  ;;  %v3228_v37 = vpop.f32.mrb[80].mxu0 }
 0x390   : > { %v2476_v2 = vmul.f32 %v2237_v63, %v4205_v0  ;;  %v2480_v48 = vmul.f32 %v3228_v37, %v4134_v10  ;;  %v2396_v13 = vpop.f32.mrb[81].mxu0 }
 0x391   : > { %v2477_v27 = vmul.f32 %v2396_v13, %v4137_v51 }
 0x392   : > { %v2241_v12 = vpop.f32.mrb[66].mxu1  ;;  %v2539_v19 = vadd.f32 %v2476_v2, %v2475_v36 }
 0x393   : > { %v2478_v54 = vmul.f32 %v2241_v12, %v4216_v52  ;;  %v2243_v1 = vpop.f32.mrb[67].mxu1  ;;  %v3231_v39 = vpop.f32.mrb[82].mxu0 }
 0x394   : > { %v2479_v50 = vmul.f32 %v2243_v1, %v4219_v58  ;;  %v2486_v7 = vmul.f32 %v3231_v39, %v4144_v61  ;;  %v2406_v18 = vpop.f32.mrb[83].mxu0  ;;  %v2540_v38 = vadd.f32 %v2539_v19, %v2477_v27 }
 0x395   : > { %v2483_v9 = vmul.f32 %v2406_v18, %v4146_v4 }
 0x396   : > { %v2543_v0 = vadd.f32 %v2479_v50, %v2478_v54  ;;  %2541 = vadd.xlane.f32.xlu0 %v2540_v38  ;;  %v2247_v10 = vpop.f32.mrb[68].mxu1 }
 0x397   : > { %v2481_v25 = vmul.f32 %v2247_v10, %v4224_v21  ;;  %v2249_v51 = vpop.f32.mrb[69].mxu1  ;;  %v3234_v35 = vpop.f32.mrb[84].mxu0 }
 0x398   : > { %v2482_v36 = vmul.f32 %v2249_v51, %v4227_v43  ;;  %v2492_v52 = vmul.f32 %v3234_v35, %v4154_v42  ;;  %v2416_v63 = vpop.f32.mrb[85].mxu0  ;;  %v2544_v37 = vadd.f32 %v2543_v0, %v2480_v48 }
 0x399   : > { %v2489_v58 = vmul.f32 %v2416_v63, %v4156_v49 }
 0x39a   : > { %2545 = vadd.xlane.f32.xlu0 %v2544_v37  ;;  %v2253_v61 = vpop.f32.mrb[70].mxu1  ;;  %v2547_v2 = vadd.f32 %v2482_v36, %v2481_v25  ;;  %v4491_v36 = vld [vmem:[#allocation3_spill] sm:$0xff] }
 0x39b   : > { %v2484_v4 = vmul.f32 %v2253_v61, %v4232_v41  ;;  %v2255_v13 = vpop.f32.mrb[71].mxu1 }
 0x39c   : > { %v2485_v27 = vmul.f32 %v2255_v13, %v4235_v26  ;;  %v2548_v12 = vadd.f32 %v2547_v2, %v2483_v9 }
 0x39d   : > { %v3237_v21 = vpop.f32.mrb[86].mxu0 }
 0x39e   : > { %v2551_v19 = vadd.f32 %v2485_v27, %v2484_v4  ;;  %v2498_v54 = vmul.f32 %v3237_v21, %v4165_v60  ;;  %v2426_v43 = vpop.f32.mrb[87].mxu0  ;;  %2549 = vadd.xlane.f32.xlu1 %v2548_v12  ;;  %v2259_v42 = vpop.f32.mrb[72].mxu1  ;;  %v4492_v4 = vld [vmem:[#allocation4_spill] sm:$0xff] }
 0x39f   : > { %v2495_v48 = vmul.f32 %v2426_v43, %v4169_v3  ;;  %v2487_v49 = vmul.f32 %v2259_v42, %v4240_v47  ;;  %v2261_v1 = vpop.f32.mrb[73].mxu1 }
 0x3a0   : > { %v2488_v39 = vmul.f32 %v2261_v1, %v4243_v11  ;;  %v2552_v50 = vadd.f32 %v2551_v19, %v2486_v7 }
 0x3a2   : > { %v3240_v41 = vpop.f32.mrb[88].mxu0  ;;  %v2555_v18 = vadd.f32 %v2488_v39, %v2487_v49  ;;  %2553 = vadd.xlane.f32.xlu1 %v2552_v50  ;;  %v2265_v9 = vpop.f32.mrb[74].mxu1 }
 0x3a3   : > { %v2504_v26 = vmul.f32 %v3240_v41, %v4176_v40  ;;  %v2436_v38 = vpop.f32.mrb[89].mxu0  ;;  %v2490_v0 = vmul.f32 %v2265_v9, %v4248_v57  ;;  %v2267_v10 = vpop.f32.mrb[75].mxu1 }
 0x3a4   : > { %v2501_v60 = vmul.f32 %v2436_v38, %v4179_v45  ;;  %v2491_v3 = vmul.f32 %v2267_v10, %v4251_v62  ;;  %v2556_v25 = vadd.f32 %v2555_v18, %v2489_v58 }
 0x3a6   : > { %v3243_v47 = vpop.f32.mrb[90].mxu0  ;;  %v2559_v51 = vadd.f32 %v2491_v3, %v2490_v0  ;;  %2557 = vadd.xlane.f32.xlu0 %v2556_v25  ;;  %v2271_v35 = vpop.f32.mrb[76].mxu1 }
 0x3a7   : > { %v2510_v11 = vmul.f32 %v3243_v47, %v4185_v53  ;;  %v2446_v7 = vpop.f32.mrb[91].mxu0  ;;  %v2493_v63 = vmul.f32 %v2271_v35, %v4256_v20  ;;  %v2273_v37 = vpop.f32.mrb[77].mxu1 }
 0x3a8   : > { %v2507_v40 = vmul.f32 %v2446_v7, %v4491_v36  ;;  %v2494_v45 = vmul.f32 %v2273_v37, %v4259_v44  ;;  %v2560_v61 = vadd.f32 %v2559_v51, %v2492_v52 }
 0x3aa   : > { %v3246_v57 = vpop.f32.mrb[92].mxu0  ;;  %v2563_v2 = vadd.f32 %v2494_v45, %v2493_v63  ;;  %2561 = vadd.xlane.f32.xlu1 %v2560_v61  ;;  %v2277_v13 = vpop.f32.mrb[78].mxu1 }
 0x3ab   : > { %v2516_v62 = vmul.f32 %v3246_v57, %v4492_v4  ;;  %v2456_v58 = vpop.f32.mrb[93].mxu0  ;;  %v2496_v27 = vmul.f32 %v2277_v13, %v4264_v22  ;;  %v2279_v12 = vpop.f32.mrb[79].mxu1 }
 0x3ac   : > { %v2513_v53 = vmul.f32 %v2456_v58, %v4198_v5  ;;  %v2497_v21 = vmul.f32 %v2279_v12, %v4267_v8  ;;  %v2564_v19 = vadd.f32 %v2563_v2, %v2495_v48 }
 0x3ae   : > { %v3249_v20 = vpop.f32.mrb[94].mxu0  ;;  %v2567_v43 = vadd.f32 %v2497_v21, %v2496_v27  ;;  %2565 = vadd.xlane.f32.xlu0 %v2564_v19  ;;  %v2283_v42 = vpop.f32.mrb[80].mxu1  ;;  %v2526_v19 = vld [vmem:[%s4325_s16 + $0x18] sm:$0xff] }
 0x3af   : > { %v2522_v44 = vmul.f32 %v3249_v20, %v4208_v24  ;;  %v2466_v52 = vpop.f32.mrb[95].mxu0  ;;  %v2499_v1 = vmul.f32 %v2283_v42, %v4272_v23  ;;  %v2285_v39 = vpop.f32.mrb[81].mxu1 }
 0x3b0   : > { %v2519_v49 = vmul.f32 %v2466_v52, %v4211_v15  ;;  %v2500_v5 = vmul.f32 %v2285_v39, %v4275_v6  ;;  %v2568_v50 = vadd.f32 %v2567_v43, %v2498_v54 }
 0x3b2   : > { %v2571_v22 = vadd.f32 %v2500_v5, %v2499_v1  ;;  %2569 = vadd.xlane.f32.xlu1 %v2568_v50  ;;  %v2289_v41 = vpop.f32.mrb[82].mxu1  ;;  %v2529_v5 = vld [vmem:[%s4325_s16 + $0x30] sm:$0xff] }
 0x3b3   : > { %v2502_v8 = vmul.f32 %v2289_v41, %v4279_v59  ;;  %v2291_v48 = vpop.f32.mrb[83].mxu1  ;;  %v2530_v41 = vld [vmem:[%s4325_s16 + $0x38] sm:$0xff] }
 0x3b4   : > { %v2503_v18 = vmul.f32 %v2291_v48, %v4282_v46  ;;  %v2572_v24 = vadd.f32 %v2571_v22, %v2501_v60 }
 0x3b6   : > { %v2575_v38 = vadd.f32 %v2503_v18, %v2502_v8  ;;  %2573 = vadd.xlane.f32.xlu0 %v2572_v24  ;;  %v2295_v9 = vpop.f32.mrb[84].mxu1  ;;  %v2531_v18 = vld [vmem:[%s4325_s16 + $0x40] sm:$0xff] }
 0x3b7   : > { %v2505_v15 = vmul.f32 %v2295_v9, %v4285_v29  ;;  %v2297_v0 = vpop.f32.mrb[85].mxu1  ;;  %v2532_v9 = vld [vmem:[%s4325_s16 + $0x48] sm:$0xff] }
 0x3b8   : > { %v2506_v23 = vmul.f32 %v2297_v0, %v4288_v55  ;;  %v2576_v10 = vadd.f32 %v2575_v38, %v2504_v26 }
 0x3ba   : > { %v2579_v6 = vadd.f32 %v2506_v23, %v2505_v15  ;;  %2577 = vadd.xlane.f32.xlu1 %v2576_v10  ;;  %v2301_v54 = vpop.f32.mrb[86].mxu1  ;;  %v2533_v23 = vld [vmem:[%s4325_s16 + $0x50] sm:$0xff] }
 0x3bb   : > { %v2508_v3 = vmul.f32 %v2301_v54, %v4291_v32  ;;  %v2303_v25 = vpop.f32.mrb[87].mxu1  ;;  %v2534_v54 = vld [vmem:[%s4325_s16 + $0x58] sm:$0xff] }
 0x3bc   : > { %v2509_v59 = vmul.f32 %v2303_v25, %v4294_v14  ;;  %v2580_v47 = vadd.f32 %v2579_v6, %v2507_v40 }
 0x3be   : > { %v2583_v46 = vadd.f32 %v2509_v59, %v2508_v3  ;;  %2581 = vadd.xlane.f32.xlu0 %v2580_v47  ;;  %v2307_v60 = vpop.f32.mrb[88].mxu1  ;;  %v2535_v59 = vld [vmem:[%s4325_s16 + $0x60] sm:$0xff] }
 0x3bf   : > { %v2511_v51 = vmul.f32 %v2307_v60, %v4297_v16  ;;  %v2309_v7 = vpop.f32.mrb[89].mxu1  ;;  %v2536_v60 = vld [vmem:[%s4325_s16 + $0x68] sm:$0xff] }
 0x3c0   : > { %v2512_v29 = vmul.f32 %v2309_v7, %v4300_v17  ;;  %v2584_v35 = vadd.f32 %v2583_v46, %v2510_v11 }
 0x3c2   : > { %v2587_v55 = vadd.f32 %v2512_v29, %v2511_v51  ;;  %2585 = vadd.xlane.f32.xlu1 %v2584_v35  ;;  %v2313_v26 = vpop.f32.mrb[90].mxu1  ;;  %v2537_v29 = vld [vmem:[%s4325_s16 + $0x70] sm:$0xff] }
 0x3c3   : > { %v2514_v36 = vmul.f32 %v2313_v26, %v4303_v28  ;;  %v2315_v63 = vpop.f32.mrb[91].mxu1  ;;  %v2538_v26 = vld [vmem:[%s4325_s16 + $0x78] sm:$0xff] }
 0x3c4   : > { %v2515_v32 = vmul.f32 %v2315_v63, %v4306_v56  ;;  %v2588_v37 = vadd.f32 %v2587_v55, %v2513_v53  ;;  %v2524_v53 = vld [vmem:[%s4325_s16 + $0x8] sm:$0xff] }
 0x3c6   : > { %v2591_v14 = vadd.f32 %v2515_v32, %v2514_v36  ;;  %2589 = vadd.xlane.f32.xlu0 %v2588_v37  ;;  %v2319_v40 = vpop.f32.mrb[92].mxu1 }
 0x3c7   : > { %v2517_v45 = vmul.f32 %v2319_v40, %v4309_v30  ;;  %v2321_v16 = vpop.f32.mrb[93].mxu1 }
 0x3c8   : > { %v2518_v61 = vmul.f32 %v2321_v16, %v4312_v31  ;;  %v2592_v17 = vadd.f32 %v2591_v14, %v2516_v62  ;;  %v2523_v31 = vld [vmem:[%s4325_s16] sm:$0xff] }
 0x3ca   : > { %v2595_v11 = vadd.f32 %v2518_v61, %v2517_v45  ;;  %2593 = vadd.xlane.f32.xlu1 %v2592_v17  ;;  %v2325_v57 = vpop.f32.mrb[94].mxu1 }
 0x3cb   : > { %v2520_v28 = vmul.f32 %v2325_v57, %v4315_v33  ;;  %v2327_v56 = vpop.f32.mrb[95].mxu1 }
 0x3cc   : > { %v2521_v2 = vmul.f32 %v2327_v56, %v4318_v34  ;;  %v2596_v4 = vadd.f32 %v2595_v11, %v2519_v49  ;;  %v2525_v34 = vld [vmem:[%s4325_s16 + $0x10] sm:$0xff]  ;;  %v2528_v49 = vld [vmem:[%s4325_s16 + $0x28] sm:$0xff] }
 0x3ce   : > { %v2599_v58 = vadd.f32 %v2521_v2, %v2520_v28  ;;  %2597 = vadd.xlane.f32.xlu0 %v2596_v4 }
 0x3d0   : > { %v2600_v30 = vadd.f32 %v2599_v58, %v2522_v44  ;;  %v2527_v44 = vld [vmem:[%s4325_s16 + $0x20] sm:$0xff] }
 0x3d2   : > { %2601 = vadd.xlane.f32.xlu1 %v2600_v30 }
 0x423   : > { %v2542_v62 = vpop.xlane.xlu0 %2541 }
 0x424   : > { %v2603_v13 = vadd.f32 %v2542_v62, %v2523_v31 }
 0x426   : > { %2620 = vst.msk [vmem:[%s4325_s16] sm:$0xff] %vm1259_vm2, %v2603_v13 }
 0x427   : > { %v2546_v33 = vpop.xlane.xlu0 %2545 }
 0x428   : > { %v2604_v27 = vadd.f32 %v2546_v33, %v2524_v53 }
 0x42a   : > { %2621 = vst.msk [vmem:[%s4325_s16 + $0x8] sm:$0xff] %vm1259_vm2, %v2604_v27 }
 0x42b   : > { %v2550_v12 = vpop.xlane.xlu1 %2549 }
 0x42c   : > { %v2605_v21 = vadd.f32 %v2550_v12, %v2525_v34 }
 0x42e   : > { %2622 = vst.msk [vmem:[%s4325_s16 + $0x10] sm:$0xff] %vm1259_vm2, %v2605_v21 }
 0x42f   : > { %v2554_v20 = vpop.xlane.xlu1 %2553 }
 0x430   : > { %v2606_v43 = vadd.f32 %v2554_v20, %v2526_v19 }
 0x432   : > { %2623 = vst.msk [vmem:[%s4325_s16 + $0x18] sm:$0xff] %vm1259_vm2, %v2606_v43 }
 0x433   : > { %v2558_v52 = vpop.xlane.xlu0 %2557 }
 0x434   : > { %v2607_v42 = vadd.f32 %v2558_v52, %v2527_v44 }
 0x436   : > { %2624 = vst.msk [vmem:[%s4325_s16 + $0x20] sm:$0xff] %vm1259_vm2, %v2607_v42 }
 0x437   : > { %v2562_v1 = vpop.xlane.xlu1 %2561 }
 0x438   : > { %v2608_v39 = vadd.f32 %v2562_v1, %v2528_v49 }
 0x43a   : > { %2625 = vst.msk [vmem:[%s4325_s16 + $0x28] sm:$0xff] %vm1259_vm2, %v2608_v39 }
 0x43b   : > { %v2566_v50 = vpop.xlane.xlu0 %2565 }
 0x43c   : > { %v2609_v22 = vadd.f32 %v2566_v50, %v2529_v5 }
 0x43e   : > { %2626 = vst.msk [vmem:[%s4325_s16 + $0x30] sm:$0xff] %vm1259_vm2, %v2609_v22 }
 0x43f   : > { %v2570_v8 = vpop.xlane.xlu1 %2569 }
 0x440   : > { %v2610_v48 = vadd.f32 %v2570_v8, %v2530_v41 }
 0x442   : > { %2627 = vst.msk [vmem:[%s4325_s16 + $0x38] sm:$0xff] %vm1259_vm2, %v2610_v48 }
 0x443   : > { %v2574_v24 = vpop.xlane.xlu0 %2573 }
 0x444   : > { %v2611_v38 = vadd.f32 %v2574_v24, %v2531_v18 }
 0x446   : > { %2628 = vst.msk [vmem:[%s4325_s16 + $0x40] sm:$0xff] %vm1259_vm2, %v2611_v38 }
 0x447   : > { %v2578_v15 = vpop.xlane.xlu1 %2577 }
 0x448   : > { %v2612_v0 = vadd.f32 %v2578_v15, %v2532_v9 }
 0x44a   : > { %2629 = vst.msk [vmem:[%s4325_s16 + $0x48] sm:$0xff] %vm1259_vm2, %v2612_v0 }
 0x44b   : > { %v2582_v10 = vpop.xlane.xlu0 %2581 }
 0x44c   : > { %v2613_v6 = vadd.f32 %v2582_v10, %v2533_v23 }
 0x44e   : > { %2630 = vst.msk [vmem:[%s4325_s16 + $0x50] sm:$0xff] %vm1259_vm2, %v2613_v6 }
 0x44f   : > { %v2586_v3 = vpop.xlane.xlu1 %2585 }
 0x450   : > { %v2614_v25 = vadd.f32 %v2586_v3, %v2534_v54 }
 0x452   : > { %2631 = vst.msk [vmem:[%s4325_s16 + $0x58] sm:$0xff] %vm1259_vm2, %v2614_v25 }
 0x453   : > { %v2590_v47 = vpop.xlane.xlu0 %2589 }
 0x454   : > { %v2615_v46 = vadd.f32 %v2590_v47, %v2535_v59 }
 0x456   : > { %2632 = vst.msk [vmem:[%s4325_s16 + $0x60] sm:$0xff] %vm1259_vm2, %v2615_v46 }
 0x457   : > { %v2594_v51 = vpop.xlane.xlu1 %2593 }
 0x458   : > { %v2616_v7 = vadd.f32 %v2594_v51, %v2536_v60 }
 0x45a   : > { %2633 = vst.msk [vmem:[%s4325_s16 + $0x68] sm:$0xff] %vm1259_vm2, %v2616_v7 }
 0x45b   : > { %v2598_v35 = vpop.xlane.xlu0 %2597 }
 0x45c   : > { %v2617_v55 = vadd.f32 %v2598_v35, %v2537_v29 }
 0x45e   : > { %2634 = vst.msk [vmem:[%s4325_s16 + $0x70] sm:$0xff] %vm1259_vm2, %v2617_v55 }
 0x45f   : > { %v2602_v36 = vpop.xlane.xlu1 %2601 }
 0x460   : > { %v2618_v63 = vadd.f32 %v2602_v36, %v2538_v26 }
 0x462   : > { %2635 = vst.msk [vmem:[%s4325_s16 + $0x78] sm:$0xff] %vm1259_vm2, %v2618_v63 }
 0x463 PF: > { %s15_s20 = sadd.s32 1, %s3557_s20   ;;  %s4493_s18 = smov %s3553_s19 }
 0x464   : > { %p12_p5 = scmp.ge.s32.totalorder %s15_s20, 5   ;;  %s4494_s19 = smov %s4496_s21 }
 0x466   :  { %14 = sbr.rel (!%p12_p5) target bundleno = 2 (0x2), region = 83 }

</bundles_post_ra>
